<compile_context>
chip_gen: v7x
topology: tpu7x:2x2x1
jax: 0.10.0
libtpu: 0.0.40
codegen_flags: <defaults>
</compile_context>

<pallas_src>
import math

import jax
import jax.numpy as jnp
from jax.experimental import pallas as pl
from jax.experimental.pallas import tpu as pltpu


def _round_up(v, m):
    return ((v + m - 1) // m) * m


# -----------------------------------------------------------------------------
# Fused decoder kernel
# -----------------------------------------------------------------------------
def _make_decoder_kernel(T, BP, HP, O, OUT_W, L):
    """T: seq len, BP: padded batch (sublane multiple), HP: padded fused state
    width ([h_mean | h_logvar], lane multiple), O: output dim, OUT_W: lane-dense
    output width, L: number of stacked LSTM layers."""

    def decoder_kernel(*refs):
        x_ref = refs[0]                              # bf16 (T*BP, D), time-major
        layer_refs = refs[1:1 + 3 * L]
        w_head_ref, b_head_ref, eps_ref = refs[1 + 3 * L:4 + 3 * L]
        out_ref = refs[4 + 3 * L]                    # f32 (T*BP, OUT_W)

        layer_in = x_ref[...]                        # bf16 activations
        for l in range(L):                           # static layer loop
            w_ih = layer_refs[3 * l][...]            # bf16 (D_in, 4*HP) fused gates
            w_hh = layer_refs[3 * l + 1][...]        # bf16 (HP, 4*HP) block-diag
            b = layer_refs[3 * l + 2][...]           # f32  (1, 4*HP)

            # Hoisted input projection: one MXU pass for all T steps (bf16
            # operands, f32 accumulation).
            gates_x = jnp.dot(layer_in, w_ih,
                              preferred_element_type=jnp.float32) + b   # (T*BP, 4*HP)

            # Recurrence: fully unrolled (T small & static); h/c stay in
            # registers, every slice below is (8, 128)-tile aligned.
            h = jnp.zeros((BP, HP), jnp.float32)
            c = jnp.zeros((BP, HP), jnp.float32)
            h_steps = []
            for t in range(T):
                g = gates_x[t * BP:(t + 1) * BP, :] + jnp.dot(
                    h.astype(jnp.bfloat16), w_hh,
                    preferred_element_type=jnp.float32)                 # (BP, 4*HP)
                # Gate layout: [ i | f | o | g ], each block HP (128) lanes.
                sig = jax.nn.sigmoid(g[:, :3 * HP])     # one EUP pass: i, f, o
                tg = jnp.tanh(g[:, 3 * HP:])            # one EUP pass: g
                c = sig[:, HP:2 * HP] * c + sig[:, :HP] * tg
                h = sig[:, 2 * HP:3 * HP] * jnp.tanh(c)
                h_steps.append(h)
            layer_in = jnp.concatenate(h_steps, axis=0).astype(jnp.bfloat16)

        # Head: one matmul producing two 128-aligned slabs:
        #   base   = [ mu | logvar | mu (reparam base) | 0 ... ]
        #   lv_dup = [ 0  | 0      | logvar             | 0 ... ]
        # eps_ref is nonzero only in the reparam lanes, so a single full-width
        # FMA + exp yields [mu | logvar | reparam | 0...] with ONE dense store.
        proj = jnp.dot(layer_in, w_head_ref[...],
                       preferred_element_type=jnp.float32) + b_head_ref[...]
        base = proj[:, :OUT_W]
        lv_dup = proj[:, OUT_W:]
        out_ref[...] = base + eps_ref[...] * jnp.exp(0.5 * lv_dup)

    return decoder_kernel


def _call_decoder(x_flat, layers, w_head, b_head, eps_flat, T, BP, HP, O, OUT_W):
    L = len(layers)
    vmem = pl.BlockSpec(memory_space=pltpu.MemorySpace.VMEM)

    inputs, in_specs = [x_flat], [vmem]
    for w_ih, w_hh, b in layers:
        inputs += [w_ih, w_hh, b]
        in_specs += [vmem, vmem, vmem]
    inputs += [w_head, b_head, eps_flat]
    in_specs += [vmem, vmem, vmem]

    return pl.pallas_call(
        _make_decoder_kernel(T, BP, HP, O, OUT_W, L),
        out_shape=jax.ShapeDtypeStruct((T * BP, OUT_W), jnp.float32),
        in_specs=in_specs,
        out_specs=vmem,
    )(*inputs)


# -----------------------------------------------------------------------------
# Fused-parameter construction (branch fusion along lanes, 128-lane gate blocks)
# -----------------------------------------------------------------------------
# PyTorch gate order along the 4H axis is [i, f, g, o]; the fused layout puts
# the sigmoid gates first: blocks [i, f, o, g], each HP lanes wide with
# [mean (H) | logvar (H) | zero pad] inside the block.
_GATE_SRC_DST = ((0, 0), (1, 1), (3, 2), (2, 3))     # (pytorch idx, fused block)


def _fuse_gates_shared(w_m, w_l, H, HP):
    """Both branches read the same input rows: (rows, 4H) x2 -> (rows, 4*HP)."""
    rows = w_m.shape[0]
    out = jnp.zeros((rows, 4 * HP), jnp.float32)
    for src, dst in _GATE_SRC_DST:
        out = out.at[:, dst * HP:dst * HP + H].set(w_m[:, src * H:(src + 1) * H])
        out = out.at[:, dst * HP + H:dst * HP + 2 * H].set(w_l[:, src * H:(src + 1) * H])
    return out


def _fuse_gates_blockdiag(w_m, w_l, H, HP):
    """Each branch's state feeds only its own gates: (H, 4H) x2 -> (HP, 4*HP)."""
    out = jnp.zeros((HP, 4 * HP), jnp.float32)
    for src, dst in _GATE_SRC_DST:
        out = out.at[0:H, dst * HP:dst * HP + H].set(w_m[:, src * H:(src + 1) * H])
        out = out.at[H:2 * H, dst * HP + H:dst * HP + 2 * H].set(w_l[:, src * H:(src + 1) * H])
    return out


def _build_head(params_mean, params_lv, H, HP, O, OUT_W):
    w_mu, w_lv = params_mean["w_out"], params_lv["w_out"]     # (H, O)
    b_mu, b_lv = params_mean["b_out"], params_lv["b_out"]     # (1, O)
    w = jnp.zeros((HP, 2 * OUT_W), jnp.float32)
    w = w.at[0:H, 0:O].set(w_mu)                               # mu
    w = w.at[H:2 * H, O:2 * O].set(w_lv)                       # logvar
    w = w.at[0:H, 2 * O:3 * O].set(w_mu)                       # mu (reparam base)
    w = w.at[H:2 * H, OUT_W + 2 * O:OUT_W + 3 * O].set(w_lv)   # logvar (for std)
    b = jnp.zeros((1, 2 * OUT_W), jnp.float32)
    b = b.at[:, 0:O].set(b_mu)
    b = b.at[:, O:2 * O].set(b_lv)
    b = b.at[:, 2 * O:3 * O].set(b_mu)
    b = b.at[:, OUT_W + 2 * O:OUT_W + 3 * O].set(b_lv)
    return w.astype(jnp.bfloat16), b


def _build_fused_params(params_mean, params_lv, H, HP, O, OUT_W):
    layers = []
    for idx, (pm, pv) in enumerate(zip(params_mean["lstm"], params_lv["lstm"])):
        wi_m, wh_m, b_m = pm
        wi_l, wh_l, b_l = pv
        if idx == 0:
            w_ih = _fuse_gates_shared(wi_m, wi_l, H, HP)       # both read the same x
        else:
            w_ih = _fuse_gates_blockdiag(wi_m, wi_l, H, HP)    # each reads its own h
        w_hh = _fuse_gates_blockdiag(wh_m, wh_l, H, HP)
        b = _fuse_gates_shared(b_m, b_l, H, HP)                # biases stay f32
        layers.append((w_ih.astype(jnp.bfloat16), w_hh.astype(jnp.bfloat16), b))
    w_head, b_head = _build_head(params_mean, params_lv, H, HP, O, OUT_W)
    return layers, w_head, b_head


# -----------------------------------------------------------------------------
# Parameter init (PyTorch-style uniform(-1/sqrt(H), 1/sqrt(H)), b = b_ih + b_hh)
# -----------------------------------------------------------------------------
def init_branch(key, input_dim, hidden_dim, output_dim, num_layers):
    bound = 1.0 / math.sqrt(hidden_dim)
    layers = []
    for layer in range(num_layers):
        d_in = input_dim if layer == 0 else hidden_dim
        key, k1, k2, k3, k4 = jax.random.split(key, 5)
        w_ih = jax.random.uniform(k1, (d_in, 4 * hidden_dim), jnp.float32, -bound, bound)
        w_hh = jax.random.uniform(k2, (hidden_dim, 4 * hidden_dim), jnp.float32, -bound, bound)
        b_ih = jax.random.uniform(k3, (1, 4 * hidden_dim), jnp.float32, -bound, bound)
        b_hh = jax.random.uniform(k4, (1, 4 * hidden_dim), jnp.float32, -bound, bound)
        layers.append((w_ih, w_hh, b_ih + b_hh))   # PyTorch adds b_ih + b_hh
    key, k1, k2 = jax.random.split(key, 3)
    w_out = jax.random.uniform(k1, (hidden_dim, output_dim), jnp.float32, -bound, bound)
    b_out = jax.random.uniform(k2, (1, output_dim), jnp.float32, -bound, bound)
    return {"lstm": layers, "w_out": w_out, "b_out": b_out}


# -----------------------------------------------------------------------------
# Decoder forward (batch_first, like the PyTorch module)
# -----------------------------------------------------------------------------
def decoder_forward(x, params_mean, params_lv, rng):
    """x: (B, T, input_dim) f32 -> (mu, logvar, reparam), each (B, T, output_dim)."""
    B, T, D = x.shape
    H = params_mean["lstm"][0][1].shape[0]
    O = params_mean["w_out"].shape[1]

    BP = _round_up(max(B, 8), 8)        # sublane-aligned batch
    HP = _round_up(2 * H, 128)          # lane-aligned fused state [h_mean | h_lv]
    OUT_W = _round_up(3 * O, 128)       # lane-dense output slab width

    layers, w_head, b_head = _build_fused_params(params_mean, params_lv, H, HP, O, OUT_W)

    # Time-major, batch padded to BP, flattened; activations pre-cast to bf16.
    x_tm = jnp.zeros((T, BP, D), jnp.float32).at[:, :B, :].set(jnp.transpose(x, (1, 0, 2)))
    x_flat = x_tm.reshape(T * BP, D).astype(jnp.bfloat16)

    # TODO(synk): torch's .normal_() RNG stream has no JAX equivalent; eps is
    # drawn from jax.random.normal (same distribution, different stream).
    eps = jax.random.normal(rng, (B, T, O), jnp.float32)
    eps_full = jnp.zeros((T, BP, OUT_W), jnp.float32).at[:, :B, 2 * O:3 * O].set(
        jnp.transpose(eps, (1, 0, 2)))
    eps_flat = eps_full.reshape(T * BP, OUT_W)

    out = _call_decoder(x_flat, layers, w_head, b_head, eps_flat, T, BP, HP, O, OUT_W)

    out = out.reshape(T, BP, OUT_W)[:, :B, :].transpose(1, 0, 2)   # back to batch_first
    mu = out[..., 0:O]
    logvar = out[..., O:2 * O]
    rep = out[..., 2 * O:3 * O]
    return mu, logvar, rep


# -----------------------------------------------------------------------------
# Pure-JAX reference (for mu / logvar validation)
# -----------------------------------------------------------------------------
def _reference_forward(x, params_mean, params_lv):
    def lstm_branch(xb, layer_params):
        h_seq = xb
        for (w_ih, w_hh, b) in layer_params:
            Bb, _, _ = h_seq.shape
            Hh = w_hh.shape[0]

            def step(carry, x_t):
                h, c = carry
                gates = x_t @ w_ih + h @ w_hh + b[0]
                i = jax.nn.sigmoid(gates[:, 0:Hh])
                f = jax.nn.sigmoid(gates[:, Hh:2 * Hh])
                g = jnp.tanh(gates[:, 2 * Hh:3 * Hh])
                o = jax.nn.sigmoid(gates[:, 3 * Hh:4 * Hh])
                c = f * c + i * g
                h = o * jnp.tanh(c)
                return (h, c), h

            init = (jnp.zeros((Bb, Hh), jnp.float32), jnp.zeros((Bb, Hh), jnp.float32))
            _, hs = jax.lax.scan(step, init, jnp.transpose(h_seq, (1, 0, 2)))
            h_seq = jnp.transpose(hs, (1, 0, 2))
        return h_seq

    mh = lstm_branch(x, params_mean["lstm"])
    lh = lstm_branch(x, params_lv["lstm"])
    mu = mh @ params_mean["w_out"] + params_mean["b_out"][0]
    logvar = lh @ params_lv["w_out"] + params_lv["b_out"][0]
    return mu, logvar


if __name__ == "__main__":
    # Shapes consistent with the module's forward:
    #   x: (batch=2, seq=8, input_dim=16), hidden_dim=32, output_dim=16,
    #   args.decoder_layer = 1
    B, T = 2, 8
    input_dim, hidden_dim, output_dim = 16, 32, 16
    decoder_layer = 1

    root = jax.random.PRNGKey(0)
    kx, km, kl, keps = jax.random.split(root, 4)

    x = jax.random.normal(kx, (B, T, input_dim), jnp.float32)
    params_mean = init_branch(km, input_dim, hidden_dim, output_dim, decoder_layer)
    params_lv = init_branch(kl, input_dim, hidden_dim, output_dim, decoder_layer)

    mu, logvar, rep = decoder_forward(x, params_mean, params_lv, keps)
    jax.block_until_ready((mu, logvar, rep))

    assert mu.shape == (B, T, output_dim)
    assert logvar.shape == (B, T, output_dim)
    assert rep.shape == (B, T, output_dim)
    assert bool(jnp.all(jnp.isfinite(mu)))
    assert bool(jnp.all(jnp.isfinite(logvar)))
    assert bool(jnp.all(jnp.isfinite(rep)))

    # Deterministic parts (mu, logvar) against a pure-JAX reference
    # (tolerance covers the bf16-operand matmuls, incl. the bf16 recurrence).
    mu_ref, logvar_ref = _reference_forward(x, params_mean, params_lv)
    assert float(jnp.max(jnp.abs(mu - mu_ref))) < 5e-2
    assert float(jnp.max(jnp.abs(logvar - logvar_ref))) < 5e-2

    # Reparametrization wiring: rep must equal eps * exp(0.5*logvar) + mu for
    # the exact eps stream fed to the kernel (regenerated from the same key).
    eps_chk = jax.random.normal(keps, (B, T, output_dim), jnp.float32)
    rep_expected = eps_chk * jnp.exp(0.5 * logvar) + mu
    assert float(jnp.max(jnp.abs(rep - rep_expected))) < 1e-3

    print("KERNEL_OK")
</pallas_src>

<mosaic_0001>
module attributes {stable_mosaic.version = 11 : i64} {
  func.func @decoder_kernel(%arg0: memref<64x16xbf16, #tpu.memory_space<vmem>>, %arg1: memref<16x512xbf16, #tpu.memory_space<vmem>>, %arg2: memref<128x512xbf16, #tpu.memory_space<vmem>>, %arg3: memref<1x512xf32, #tpu.memory_space<vmem>>, %arg4: memref<128x256xbf16, #tpu.memory_space<vmem>>, %arg5: memref<1x256xf32, #tpu.memory_space<vmem>>, %arg6: memref<64x128xf32, #tpu.memory_space<vmem>>, %arg7: memref<64x128xf32, #tpu.memory_space<vmem>>) attributes {dimension_semantics = [], scalar_prefetch = 0 : i64, scratch_operands = 0 : i64, tpu.core_type = #tpu.core_type<tc>} {
    %c0 = arith.constant 0 : index
    %c0_0 = arith.constant 0 : index
    %0 = vector.load %arg0[%c0, %c0_0] : memref<64x16xbf16, #tpu.memory_space<vmem>>, vector<64x16xbf16>
    %c0_1 = arith.constant 0 : index
    %c0_2 = arith.constant 0 : index
    %1 = vector.load %arg1[%c0_1, %c0_2] : memref<16x512xbf16, #tpu.memory_space<vmem>>, vector<16x512xbf16>
    %c0_3 = arith.constant 0 : index
    %c0_4 = arith.constant 0 : index
    %2 = vector.load %arg2[%c0_3, %c0_4] : memref<128x512xbf16, #tpu.memory_space<vmem>>, vector<128x512xbf16>
    %c0_5 = arith.constant 0 : index
    %c0_6 = arith.constant 0 : index
    %3 = vector.load %arg3[%c0_5, %c0_6] : memref<1x512xf32, #tpu.memory_space<vmem>>, vector<1x512xf32>
    %cst = arith.constant dense<0.000000e+00> : vector<64x512xf32>
    %4 = tpu.matmul %0, %1, %cst {dimension_numbers = #tpu.dot_dimension_numbers<[1], [0], [0], [1], [0, 0, 1, 1], [], []>} : vector<64x16xbf16>, vector<16x512xbf16>, vector<64x512xf32> -> vector<64x512xf32>
    %5 = vector.broadcast %3 : vector<1x512xf32> to vector<64x512xf32>
    %6 = arith.addf %4, %5 : vector<64x512xf32>
    %cst_7 = arith.constant 0.000000e+00 : f32
    %7 = vector.broadcast %cst_7 : f32 to vector<8x128xf32>
    %cst_8 = arith.constant 0.000000e+00 : f32
    %8 = vector.broadcast %cst_8 : f32 to vector<8x128xf32>
    %9 = vector.extract_strided_slice %6 {offsets = [0, 0], sizes = [8, 512], strides = [1, 1]} : vector<64x512xf32> to vector<8x512xf32>
    %10 = arith.truncf %7 : vector<8x128xf32> to vector<8x128xbf16>
    %cst_9 = arith.constant dense<0.000000e+00> : vector<8x512xf32>
    %11 = tpu.matmul %10, %2, %cst_9 {dimension_numbers = #tpu.dot_dimension_numbers<[1], [0], [0], [1], [0, 0, 1, 1], [], []>} : vector<8x128xbf16>, vector<128x512xbf16>, vector<8x512xf32> -> vector<8x512xf32>
    %12 = arith.addf %9, %11 : vector<8x512xf32>
    %13 = vector.extract_strided_slice %12 {offsets = [0, 0], sizes = [8, 384], strides = [1, 1]} : vector<8x512xf32> to vector<8x384xf32>
    %14 = arith.negf %13 : vector<8x384xf32>
    %15 = math.exp %14 : vector<8x384xf32>
    %cst_10 = arith.constant 1.000000e+00 : f32
    %16 = vector.broadcast %cst_10 : f32 to vector<8x384xf32>
    %17 = arith.addf %16, %15 : vector<8x384xf32>
    %18 = arith.divf %16, %17 : vector<8x384xf32>
    %19 = vector.extract_strided_slice %12 {offsets = [0, 384], sizes = [8, 128], strides = [1, 1]} : vector<8x512xf32> to vector<8x128xf32>
    %20 = math.tanh %19 : vector<8x128xf32>
    %21 = vector.extract_strided_slice %18 {offsets = [0, 128], sizes = [8, 128], strides = [1, 1]} : vector<8x384xf32> to vector<8x128xf32>
    %22 = arith.mulf %21, %8 : vector<8x128xf32>
    %23 = vector.extract_strided_slice %18 {offsets = [0, 0], sizes = [8, 128], strides = [1, 1]} : vector<8x384xf32> to vector<8x128xf32>
    %24 = arith.mulf %23, %20 : vector<8x128xf32>
    %25 = arith.addf %22, %24 : vector<8x128xf32>
    %26 = vector.extract_strided_slice %18 {offsets = [0, 256], sizes = [8, 128], strides = [1, 1]} : vector<8x384xf32> to vector<8x128xf32>
    %27 = math.tanh %25 : vector<8x128xf32>
    %28 = arith.mulf %26, %27 : vector<8x128xf32>
    %29 = vector.extract_strided_slice %6 {offsets = [8, 0], sizes = [8, 512], strides = [1, 1]} : vector<64x512xf32> to vector<8x512xf32>
    %30 = arith.truncf %28 : vector<8x128xf32> to vector<8x128xbf16>
    %cst_11 = arith.constant dense<0.000000e+00> : vector<8x512xf32>
    %31 = tpu.matmul %30, %2, %cst_11 {dimension_numbers = #tpu.dot_dimension_numbers<[1], [0], [0], [1], [0, 0, 1, 1], [], []>} : vector<8x128xbf16>, vector<128x512xbf16>, vector<8x512xf32> -> vector<8x512xf32>
    %32 = arith.addf %29, %31 : vector<8x512xf32>
    %33 = vector.extract_strided_slice %32 {offsets = [0, 0], sizes = [8, 384], strides = [1, 1]} : vector<8x512xf32> to vector<8x384xf32>
    %34 = arith.negf %33 : vector<8x384xf32>
    %35 = math.exp %34 : vector<8x384xf32>
    %cst_12 = arith.constant 1.000000e+00 : f32
    %36 = vector.broadcast %cst_12 : f32 to vector<8x384xf32>
    %37 = arith.addf %36, %35 : vector<8x384xf32>
    %38 = arith.divf %36, %37 : vector<8x384xf32>
    %39 = vector.extract_strided_slice %32 {offsets = [0, 384], sizes = [8, 128], strides = [1, 1]} : vector<8x512xf32> to vector<8x128xf32>
    %40 = math.tanh %39 : vector<8x128xf32>
    %41 = vector.extract_strided_slice %38 {offsets = [0, 128], sizes = [8, 128], strides = [1, 1]} : vector<8x384xf32> to vector<8x128xf32>
    %42 = arith.mulf %41, %25 : vector<8x128xf32>
    %43 = vector.extract_strided_slice %38 {offsets = [0, 0], sizes = [8, 128], strides = [1, 1]} : vector<8x384xf32> to vector<8x128xf32>
    %44 = arith.mulf %43, %40 : vector<8x128xf32>
    %45 = arith.addf %42, %44 : vector<8x128xf32>
    %46 = vector.extract_strided_slice %38 {offsets = [0, 256], sizes = [8, 128], strides = [1, 1]} : vector<8x384xf32> to vector<8x128xf32>
    %47 = math.tanh %45 : vector<8x128xf32>
    %48 = arith.mulf %46, %47 : vector<8x128xf32>
    %49 = vector.extract_strided_slice %6 {offsets = [16, 0], sizes = [8, 512], strides = [1, 1]} : vector<64x512xf32> to vector<8x512xf32>
    %50 = arith.truncf %48 : vector<8x128xf32> to vector<8x128xbf16>
    %cst_13 = arith.constant dense<0.000000e+00> : vector<8x512xf32>
    %51 = tpu.matmul %50, %2, %cst_13 {dimension_numbers = #tpu.dot_dimension_numbers<[1], [0], [0], [1], [0, 0, 1, 1], [], []>} : vector<8x128xbf16>, vector<128x512xbf16>, vector<8x512xf32> -> vector<8x512xf32>
    %52 = arith.addf %49, %51 : vector<8x512xf32>
    %53 = vector.extract_strided_slice %52 {offsets = [0, 0], sizes = [8, 384], strides = [1, 1]} : vector<8x512xf32> to vector<8x384xf32>
    %54 = arith.negf %53 : vector<8x384xf32>
    %55 = math.exp %54 : vector<8x384xf32>
    %cst_14 = arith.constant 1.000000e+00 : f32
    %56 = vector.broadcast %cst_14 : f32 to vector<8x384xf32>
    %57 = arith.addf %56, %55 : vector<8x384xf32>
    %58 = arith.divf %56, %57 : vector<8x384xf32>
    %59 = vector.extract_strided_slice %52 {offsets = [0, 384], sizes = [8, 128], strides = [1, 1]} : vector<8x512xf32> to vector<8x128xf32>
    %60 = math.tanh %59 : vector<8x128xf32>
    %61 = vector.extract_strided_slice %58 {offsets = [0, 128], sizes = [8, 128], strides = [1, 1]} : vector<8x384xf32> to vector<8x128xf32>
    %62 = arith.mulf %61, %45 : vector<8x128xf32>
    %63 = vector.extract_strided_slice %58 {offsets = [0, 0], sizes = [8, 128], strides = [1, 1]} : vector<8x384xf32> to vector<8x128xf32>
    %64 = arith.mulf %63, %60 : vector<8x128xf32>
    %65 = arith.addf %62, %64 : vector<8x128xf32>
    %66 = vector.extract_strided_slice %58 {offsets = [0, 256], sizes = [8, 128], strides = [1, 1]} : vector<8x384xf32> to vector<8x128xf32>
    %67 = math.tanh %65 : vector<8x128xf32>
    %68 = arith.mulf %66, %67 : vector<8x128xf32>
    %69 = vector.extract_strided_slice %6 {offsets = [24, 0], sizes = [8, 512], strides = [1, 1]} : vector<64x512xf32> to vector<8x512xf32>
    %70 = arith.truncf %68 : vector<8x128xf32> to vector<8x128xbf16>
    %cst_15 = arith.constant dense<0.000000e+00> : vector<8x512xf32>
    %71 = tpu.matmul %70, %2, %cst_15 {dimension_numbers = #tpu.dot_dimension_numbers<[1], [0], [0], [1], [0, 0, 1, 1], [], []>} : vector<8x128xbf16>, vector<128x512xbf16>, vector<8x512xf32> -> vector<8x512xf32>
    %72 = arith.addf %69, %71 : vector<8x512xf32>
    %73 = vector.extract_strided_slice %72 {offsets = [0, 0], sizes = [8, 384], strides = [1, 1]} : vector<8x512xf32> to vector<8x384xf32>
    %74 = arith.negf %73 : vector<8x384xf32>
    %75 = math.exp %74 : vector<8x384xf32>
    %cst_16 = arith.constant 1.000000e+00 : f32
    %76 = vector.broadcast %cst_16 : f32 to vector<8x384xf32>
    %77 = arith.addf %76, %75 : vector<8x384xf32>
    %78 = arith.divf %76, %77 : vector<8x384xf32>
    %79 = vector.extract_strided_slice %72 {offsets = [0, 384], sizes = [8, 128], strides = [1, 1]} : vector<8x512xf32> to vector<8x128xf32>
    %80 = math.tanh %79 : vector<8x128xf32>
    %81 = vector.extract_strided_slice %78 {offsets = [0, 128], sizes = [8, 128], strides = [1, 1]} : vector<8x384xf32> to vector<8x128xf32>
    %82 = arith.mulf %81, %65 : vector<8x128xf32>
    %83 = vector.extract_strided_slice %78 {offsets = [0, 0], sizes = [8, 128], strides = [1, 1]} : vector<8x384xf32> to vector<8x128xf32>
    %84 = arith.mulf %83, %80 : vector<8x128xf32>
    %85 = arith.addf %82, %84 : vector<8x128xf32>
    %86 = vector.extract_strided_slice %78 {offsets = [0, 256], sizes = [8, 128], strides = [1, 1]} : vector<8x384xf32> to vector<8x128xf32>
    %87 = math.tanh %85 : vector<8x128xf32>
    %88 = arith.mulf %86, %87 : vector<8x128xf32>
    %89 = vector.extract_strided_slice %6 {offsets = [32, 0], sizes = [8, 512], strides = [1, 1]} : vector<64x512xf32> to vector<8x512xf32>
    %90 = arith.truncf %88 : vector<8x128xf32> to vector<8x128xbf16>
    %cst_17 = arith.constant dense<0.000000e+00> : vector<8x512xf32>
    %91 = tpu.matmul %90, %2, %cst_17 {dimension_numbers = #tpu.dot_dimension_numbers<[1], [0], [0], [1], [0, 0, 1, 1], [], []>} : vector<8x128xbf16>, vector<128x512xbf16>, vector<8x512xf32> -> vector<8x512xf32>
    %92 = arith.addf %89, %91 : vector<8x512xf32>
    %93 = vector.extract_strided_slice %92 {offsets = [0, 0], sizes = [8, 384], strides = [1, 1]} : vector<8x512xf32> to vector<8x384xf32>
    %94 = arith.negf %93 : vector<8x384xf32>
    %95 = math.exp %94 : vector<8x384xf32>
    %cst_18 = arith.constant 1.000000e+00 : f32
    %96 = vector.broadcast %cst_18 : f32 to vector<8x384xf32>
    %97 = arith.addf %96, %95 : vector<8x384xf32>
    %98 = arith.divf %96, %97 : vector<8x384xf32>
    %99 = vector.extract_strided_slice %92 {offsets = [0, 384], sizes = [8, 128], strides = [1, 1]} : vector<8x512xf32> to vector<8x128xf32>
    %100 = math.tanh %99 : vector<8x128xf32>
    %101 = vector.extract_strided_slice %98 {offsets = [0, 128], sizes = [8, 128], strides = [1, 1]} : vector<8x384xf32> to vector<8x128xf32>
    %102 = arith.mulf %101, %85 : vector<8x128xf32>
    %103 = vector.extract_strided_slice %98 {offsets = [0, 0], sizes = [8, 128], strides = [1, 1]} : vector<8x384xf32> to vector<8x128xf32>
    %104 = arith.mulf %103, %100 : vector<8x128xf32>
    %105 = arith.addf %102, %104 : vector<8x128xf32>
    %106 = vector.extract_strided_slice %98 {offsets = [0, 256], sizes = [8, 128], strides = [1, 1]} : vector<8x384xf32> to vector<8x128xf32>
    %107 = math.tanh %105 : vector<8x128xf32>
    %108 = arith.mulf %106, %107 : vector<8x128xf32>
    %109 = vector.extract_strided_slice %6 {offsets = [40, 0], sizes = [8, 512], strides = [1, 1]} : vector<64x512xf32> to vector<8x512xf32>
    %110 = arith.truncf %108 : vector<8x128xf32> to vector<8x128xbf16>
    %cst_19 = arith.constant dense<0.000000e+00> : vector<8x512xf32>
    %111 = tpu.matmul %110, %2, %cst_19 {dimension_numbers = #tpu.dot_dimension_numbers<[1], [0], [0], [1], [0, 0, 1, 1], [], []>} : vector<8x128xbf16>, vector<128x512xbf16>, vector<8x512xf32> -> vector<8x512xf32>
    %112 = arith.addf %109, %111 : vector<8x512xf32>
    %113 = vector.extract_strided_slice %112 {offsets = [0, 0], sizes = [8, 384], strides = [1, 1]} : vector<8x512xf32> to vector<8x384xf32>
    %114 = arith.negf %113 : vector<8x384xf32>
    %115 = math.exp %114 : vector<8x384xf32>
    %cst_20 = arith.constant 1.000000e+00 : f32
    %116 = vector.broadcast %cst_20 : f32 to vector<8x384xf32>
    %117 = arith.addf %116, %115 : vector<8x384xf32>
    %118 = arith.divf %116, %117 : vector<8x384xf32>
    %119 = vector.extract_strided_slice %112 {offsets = [0, 384], sizes = [8, 128], strides = [1, 1]} : vector<8x512xf32> to vector<8x128xf32>
    %120 = math.tanh %119 : vector<8x128xf32>
    %121 = vector.extract_strided_slice %118 {offsets = [0, 128], sizes = [8, 128], strides = [1, 1]} : vector<8x384xf32> to vector<8x128xf32>
    %122 = arith.mulf %121, %105 : vector<8x128xf32>
    %123 = vector.extract_strided_slice %118 {offsets = [0, 0], sizes = [8, 128], strides = [1, 1]} : vector<8x384xf32> to vector<8x128xf32>
    %124 = arith.mulf %123, %120 : vector<8x128xf32>
    %125 = arith.addf %122, %124 : vector<8x128xf32>
    %126 = vector.extract_strided_slice %118 {offsets = [0, 256], sizes = [8, 128], strides = [1, 1]} : vector<8x384xf32> to vector<8x128xf32>
    %127 = math.tanh %125 : vector<8x128xf32>
    %128 = arith.mulf %126, %127 : vector<8x128xf32>
    %129 = vector.extract_strided_slice %6 {offsets = [48, 0], sizes = [8, 512], strides = [1, 1]} : vector<64x512xf32> to vector<8x512xf32>
    %130 = arith.truncf %128 : vector<8x128xf32> to vector<8x128xbf16>
    %cst_21 = arith.constant dense<0.000000e+00> : vector<8x512xf32>
    %131 = tpu.matmul %130, %2, %cst_21 {dimension_numbers = #tpu.dot_dimension_numbers<[1], [0], [0], [1], [0, 0, 1, 1], [], []>} : vector<8x128xbf16>, vector<128x512xbf16>, vector<8x512xf32> -> vector<8x512xf32>
    %132 = arith.addf %129, %131 : vector<8x512xf32>
    %133 = vector.extract_strided_slice %132 {offsets = [0, 0], sizes = [8, 384], strides = [1, 1]} : vector<8x512xf32> to vector<8x384xf32>
    %134 = arith.negf %133 : vector<8x384xf32>
    %135 = math.exp %134 : vector<8x384xf32>
    %cst_22 = arith.constant 1.000000e+00 : f32
    %136 = vector.broadcast %cst_22 : f32 to vector<8x384xf32>
    %137 = arith.addf %136, %135 : vector<8x384xf32>
    %138 = arith.divf %136, %137 : vector<8x384xf32>
    %139 = vector.extract_strided_slice %132 {offsets = [0, 384], sizes = [8, 128], strides = [1, 1]} : vector<8x512xf32> to vector<8x128xf32>
    %140 = math.tanh %139 : vector<8x128xf32>
    %141 = vector.extract_strided_slice %138 {offsets = [0, 128], sizes = [8, 128], strides = [1, 1]} : vector<8x384xf32> to vector<8x128xf32>
    %142 = arith.mulf %141, %125 : vector<8x128xf32>
    %143 = vector.extract_strided_slice %138 {offsets = [0, 0], sizes = [8, 128], strides = [1, 1]} : vector<8x384xf32> to vector<8x128xf32>
    %144 = arith.mulf %143, %140 : vector<8x128xf32>
    %145 = arith.addf %142, %144 : vector<8x128xf32>
    %146 = vector.extract_strided_slice %138 {offsets = [0, 256], sizes = [8, 128], strides = [1, 1]} : vector<8x384xf32> to vector<8x128xf32>
    %147 = math.tanh %145 : vector<8x128xf32>
    %148 = arith.mulf %146, %147 : vector<8x128xf32>
    %149 = vector.extract_strided_slice %6 {offsets = [56, 0], sizes = [8, 512], strides = [1, 1]} : vector<64x512xf32> to vector<8x512xf32>
    %150 = arith.truncf %148 : vector<8x128xf32> to vector<8x128xbf16>
    %cst_23 = arith.constant dense<0.000000e+00> : vector<8x512xf32>
    %151 = tpu.matmul %150, %2, %cst_23 {dimension_numbers = #tpu.dot_dimension_numbers<[1], [0], [0], [1], [0, 0, 1, 1], [], []>} : vector<8x128xbf16>, vector<128x512xbf16>, vector<8x512xf32> -> vector<8x512xf32>
    %152 = arith.addf %149, %151 : vector<8x512xf32>
    %153 = vector.extract_strided_slice %152 {offsets = [0, 0], sizes = [8, 384], strides = [1, 1]} : vector<8x512xf32> to vector<8x384xf32>
    %154 = arith.negf %153 : vector<8x384xf32>
    %155 = math.exp %154 : vector<8x384xf32>
    %cst_24 = arith.constant 1.000000e+00 : f32
    %156 = vector.broadcast %cst_24 : f32 to vector<8x384xf32>
    %157 = arith.addf %156, %155 : vector<8x384xf32>
    %158 = arith.divf %156, %157 : vector<8x384xf32>
    %159 = vector.extract_strided_slice %152 {offsets = [0, 384], sizes = [8, 128], strides = [1, 1]} : vector<8x512xf32> to vector<8x128xf32>
    %160 = math.tanh %159 : vector<8x128xf32>
    %161 = vector.extract_strided_slice %158 {offsets = [0, 128], sizes = [8, 128], strides = [1, 1]} : vector<8x384xf32> to vector<8x128xf32>
    %162 = arith.mulf %161, %145 : vector<8x128xf32>
    %163 = vector.extract_strided_slice %158 {offsets = [0, 0], sizes = [8, 128], strides = [1, 1]} : vector<8x384xf32> to vector<8x128xf32>
    %164 = arith.mulf %163, %160 : vector<8x128xf32>
    %165 = arith.addf %162, %164 : vector<8x128xf32>
    %166 = vector.extract_strided_slice %158 {offsets = [0, 256], sizes = [8, 128], strides = [1, 1]} : vector<8x384xf32> to vector<8x128xf32>
    %167 = math.tanh %165 : vector<8x128xf32>
    %168 = arith.mulf %166, %167 : vector<8x128xf32>
    %169 = tpu.concatenate %28, %48, %68, %88, %108, %128, %148, %168 in 0 : vector<8x128xf32>, vector<8x128xf32>, vector<8x128xf32>, vector<8x128xf32>, vector<8x128xf32>, vector<8x128xf32>, vector<8x128xf32>, vector<8x128xf32> -> vector<64x128xf32>
    %170 = arith.truncf %169 : vector<64x128xf32> to vector<64x128xbf16>
    %c0_25 = arith.constant 0 : index
    %c0_26 = arith.constant 0 : index
    %171 = vector.load %arg4[%c0_25, %c0_26] : memref<128x256xbf16, #tpu.memory_space<vmem>>, vector<128x256xbf16>
    %cst_27 = arith.constant dense<0.000000e+00> : vector<64x256xf32>
    %172 = tpu.matmul %170, %171, %cst_27 {dimension_numbers = #tpu.dot_dimension_numbers<[1], [0], [0], [1], [0, 0, 1, 1], [], []>} : vector<64x128xbf16>, vector<128x256xbf16>, vector<64x256xf32> -> vector<64x256xf32>
    %c0_28 = arith.constant 0 : index
    %c0_29 = arith.constant 0 : index
    %173 = vector.load %arg5[%c0_28, %c0_29] : memref<1x256xf32, #tpu.memory_space<vmem>>, vector<1x256xf32>
    %174 = vector.broadcast %173 : vector<1x256xf32> to vector<64x256xf32>
    %175 = arith.addf %172, %174 : vector<64x256xf32>
    %176 = vector.extract_strided_slice %175 {offsets = [0, 0], sizes = [64, 128], strides = [1, 1]} : vector<64x256xf32> to vector<64x128xf32>
    %177 = vector.extract_strided_slice %175 {offsets = [0, 128], sizes = [64, 128], strides = [1, 1]} : vector<64x256xf32> to vector<64x128xf32>
    %c0_30 = arith.constant 0 : index
    %c0_31 = arith.constant 0 : index
    %178 = vector.load %arg6[%c0_30, %c0_31] : memref<64x128xf32, #tpu.memory_space<vmem>>, vector<64x128xf32>
    %cst_32 = arith.constant 5.000000e-01 : f32
    %179 = vector.broadcast %cst_32 : f32 to vector<64x128xf32>
    %180 = arith.mulf %179, %177 : vector<64x128xf32>
    %181 = math.exp %180 : vector<64x128xf32>
    %182 = arith.mulf %178, %181 : vector<64x128xf32>
    %183 = arith.addf %176, %182 : vector<64x128xf32>
    %c0_33 = arith.constant 0 : index
    %c0_34 = arith.constant 0 : index
    %184 = vector.load %arg7[%c0_33, %c0_34] : memref<64x128xf32, #tpu.memory_space<vmem>>, vector<64x128xf32>
    tpu.vector_store %arg7[%c0_33, %c0_34], %183 {strides = array<i32>} : memref<64x128xf32, #tpu.memory_space<vmem>>, vector<64x128xf32>,
    return
  }
}

</mosaic_0001>

<bundles_post_ra>
// kernel: tpu_custom_call.1
= control target key start
LH: loop header
LB: loop body
LE: loop exit
PB: predicated region body
PF: predicated region fallthrough
CT: control target
= control target key end

     0   :  { %12 = vsyncpa [#allocation3], 0  ;;  %s2806_s0 = inlined_call_operand.vmem [shape: bf16[64,16], index: 0, kind: input, shape index: {}]   ;;  %s2807_s1 = inlined_call_operand.vmem [shape: bf16[16,512], index: 1, kind: input, shape index: {}]   ;;  %s2808_s2 = inlined_call_operand.hbm [shape: bf16[128,512], index: 2, kind: input, shape index: {}]   ;;  %s2809_s3 = inlined_call_operand.vmem [shape: f32[1,512], index: 3, kind: input, shape index: {}]   ;;  %s2810_s4 = inlined_call_operand.hbm [shape: bf16[128,256], index: 4, kind: input, shape index: {}]   ;;  %s2811_s5 = inlined_call_operand.vmem [shape: f32[1,256], index: 5, kind: input, shape index: {}]   ;;  %s2812_s6 = inlined_call_operand.hbm [shape: f32[64,128], index: 6, kind: input, shape index: {}]   ;;  %s2813_s7 = inlined_call_operand.hbm [shape: f32[64,128], index: 7, kind: output, shape index: {}]  }
   0x1   :  { %13 = vsyncpa [#allocation6], 0 }
   0x2   :  { %14 = vsyncpa [#allocation4], 0  ;;  %s2089_s24 = smov [#allocation5]   ;;  %s1995_s28 = scalar_lea.hbm %s2810_s4, 2048 }
   0x3   :  { %s38_s25 = sshll.u32 %s2089_s24, 4  ;;  %p1996_p0 = scmp.ne.s32.totalorder %s2810_s4, %s1995_s28  ;;  %s39_s25 = int_to_ptr.vmem [resolvable:$true] %s38_s25 }
   0x4   :  { %p1999_p1 = scmp.lt.u32.totalorder %s1995_s28, %s2810_s4 }
   0x6   :  { %p2001_p2 = pnand %p1999_p1, %p1996_p0 }
   0x8   :  { %2004 = shalt.err (!%p2001_p2)
}
   0x9   :  { %s2005_s10 = scalar_lea.vmem %s39_s25, 2048  ;;  %p2010_p4 = scmp.lt.s32.totalorder %s39_s25, %s39_s25 }
   0xa   :  { %p2006_p3 = scmp.ne.s32.totalorder %s39_s25, %s2005_s10  ;;  %p2011_p5 = scmp.lt.s32.totalorder %s2005_s10, %s2005_s10 }
   0xc   :  { %p2012_p6 = por %p2011_p5, %p2010_p4 }
   0xe   :  { %p2013_p7 = pnand %p2012_p6, %p2006_p3 }
  0x10   :  { %2016 = shalt.err (!%p2013_p7)
}
  0x11   :  { %s2090_s11 = smov 128   ;;  %s2091_s12 = smov 8  }
  0x12   :  { %44 = dma.hbm_to_vmem [thread:$0]  %s2810_s4, 2048, %s39_s25, [#allocation6], %s2090_s11, %s2090_s11, %s2091_s12  }
  0x13   :  { %s2092_s15 = smov [#allocation2]   ;;  %s2017_s19 = scalar_lea.hbm %s2808_s2, 4096 }
  0x14   :  { %s24_s16 = sshll.u32 %s2092_s15, 4  ;;  %p2018_p8 = scmp.ne.s32.totalorder %s2808_s2, %s2017_s19  ;;  %s25_s16 = int_to_ptr.vmem [resolvable:$true] %s24_s16 }
  0x15   :  { %p2021_p9 = scmp.lt.u32.totalorder %s2017_s19, %s2808_s2 }
  0x17   :  { %p2023_p10 = pnand %p2021_p9, %p2018_p8 }
  0x19   :  { %2026 = shalt.err (!%p2023_p10)
}
  0x1a   :  { %s2027_s24 = scalar_lea.vmem %s25_s16, 4096  ;;  %p2032_p12 = scmp.lt.s32.totalorder %s25_s16, %s25_s16 }
  0x1b   :  { %p2028_p11 = scmp.ne.s32.totalorder %s25_s16, %s2027_s24  ;;  %p2033_p13 = scmp.lt.s32.totalorder %s2027_s24, %s2027_s24 }
  0x1d   :  { %p2034_p0 = por %p2033_p13, %p2032_p12 }
  0x1f   :  { %p2035_p1 = pnand %p2034_p0, %p2028_p11 }
  0x21   :  { %2038 = shalt.err (!%p2035_p1)
}
  0x22   :  { %s2093_s4 = smov 256   ;;  %s2094_s25 = smov 16  }
  0x23   :  { %30 = dma.hbm_to_vmem [thread:$0]  %s2808_s2, 4096, %s25_s16, [#allocation3], %s2093_s4, %s2093_s4, %s2094_s25  }
  0x24   :  { %s2095_s28 = smov [#allocation7]   ;;  %s2039_s9 = scalar_lea.hbm %s2812_s6, 1024 }
  0x25   :  { %s52_s29 = sshll.u32 %s2095_s28, 4  ;;  %p2040_p2 = scmp.ne.s32.totalorder %s2812_s6, %s2039_s9  ;;  %s53_s29 = int_to_ptr.vmem [resolvable:$true] %s52_s29 }
  0x26   :  { %p2043_p3 = scmp.lt.u32.totalorder %s2039_s9, %s2812_s6 }
  0x28   :  { %p2045_p4 = pnand %p2043_p3, %p2040_p2 }
  0x2a   :  { %2048 = shalt.err (!%p2045_p4)
}
  0x2b   :  { %s2049_s17 = scalar_lea.vmem %s53_s29, 1024  ;;  %p2054_p6 = scmp.lt.s32.totalorder %s53_s29, %s53_s29 }
  0x2c   :  { %p2050_p5 = scmp.ne.s32.totalorder %s53_s29, %s2049_s17  ;;  %p2055_p7 = scmp.lt.s32.totalorder %s2049_s17, %s2049_s17 }
  0x2e   :  { %p2056_p8 = por %p2055_p7, %p2054_p6 }
  0x30   :  { %p2057_p9 = pnand %p2056_p8, %p2050_p5 }
  0x32   :  { %2060 = shalt.err (!%p2057_p9)
}
  0x33   :  { %58 = dma.hbm_to_vmem [thread:$0]  %s2812_s6, 1024, %s53_s29, [#allocation6], %s2090_s11, %s2090_s11, %s2091_s12  }
  0x34   :  { %2083 = dma.done.wait [#allocation3], 4096  }
  0x35   :  { %2084 = vsyncadd [#allocation3], 4294963200 }
  0x36   :  { %2085 = dma.done.wait [#allocation6], 3072  }
  0x37   :  { %2086 = vsyncadd [#allocation6], 4294964224  ;;  %v2816_v0 = vmov 0   ;;  %v1737_v1 = vld [vmem:[%s2807_s1 + $0xc] ss:$16 sps:$4 sm:$0xff]   ;;  %v1740_v3 = vld [vmem:[%s2806_s0] sm:$0xff]   ;;  %v115_v41 = vlaneseq }
  0x38   :  { %293 = vmatprep.mubr.bf16.mxu1 %v2816_v0  ;;  %220 = vmatprep.mubr.bf16.mxu0 %v2816_v0  ;;  %v1739_v2 = vld [vmem:[%s2807_s1 + $0x8] ss:$16 sps:$4 sm:$0xff]   ;;  %vm175_vm0 = vcmask 130048   ;;  %v2191_v4 = vld [vmem:[#allocation2 + $0x4] ss:$16 sps:$4 sm:$0xff]  }
  0x39   :  { %261 = vmatprep.subr.bf16.mxu1 %v1737_v1  ;;  %v2193_v5 = vld [vmem:[#allocation2] ss:$16 sps:$4 sm:$0xff]   ;;  %v2195_v6 = vld [vmem:[#allocation2 + $0x24] ss:$16 sps:$4 sm:$0xff]   ;;  %v1747_v9 = vld [vmem:[%s2806_s0 + $0x8] sm:$0xff]   ;;  %v2356_v42 = vshrl.u32 %v115_v41, 7 }
  0x3a   :  { %262 = vmatpush1.bf16.msra.mxu1 %v1739_v2  ;;  %v2200_v7 = vld [vmem:[#allocation2 + $0x20] ss:$16 sps:$4 sm:$0xff]   ;;  %v2204_v8 = vld [vmem:[#allocation2 + $0x44] ss:$16 sps:$4 sm:$0xff]   ;;  %v1761_v21 = vld [vmem:[%s2806_s0 + $0x18] sm:$0xff]  }
  0x3b   :  { %494 = vmatprep.subr.bf16.mxu1 %v2191_v4  ;;  %v2210_v10 = vld [vmem:[#allocation2 + $0x40] ss:$16 sps:$4 sm:$0xff]   ;;  %v2213_v11 = vld [vmem:[#allocation2 + $0x64] ss:$16 sps:$4 sm:$0xff]   ;;  %v2266_v25 = vld [vmem:[#allocation2 + $0xc] ss:$16 sps:$4 sm:$0xff]  }
  0x3c   :  { %v2216_v12 = vld [vmem:[#allocation2 + $0x60] ss:$16 sps:$4 sm:$0xff]   ;;  %v1765_v13 = vld [vmem:[%s2807_s1 + $0x4] ss:$16 sps:$4 sm:$0xff]   ;;  %v2276_v26 = vld [vmem:[#allocation2 + $0x8] ss:$16 sps:$4 sm:$0xff]  }
  0x3d   :  { %1652 = vmatmul.mubr.msk.bf16.vlgmr.msra.gmra.mrb[0].mxu1 %vm175_vm0, %v1740_v3  ;;  %v1767_v14 = vld [vmem:[%s2807_s1] ss:$16 sps:$4 sm:$0xff]   ;;  %v2227_v15 = vld [vmem:[#allocation2 + $0x84] ss:$16 sps:$4 sm:$0xff]   ;;  %188 = vmatprep.subr.bf16.mxu0 %v1765_v13  ;;  %v2280_v27 = vld [vmem:[#allocation2 + $0x2c] ss:$16 sps:$4 sm:$0xff]  }
  0x3e   :  { %495 = vmatpush1.bf16.msra.mxu1 %v2193_v5  ;;  %303 = vmatprep.mubr.bf16.mxu1 %v2816_v0  ;;  %v1754_v16 = vld [vmem:[%s2806_s0 + $0x10] sm:$0xff]   ;;  %v2286_v28 = vld [vmem:[#allocation2 + $0x28] ss:$16 sps:$4 sm:$0xff]   ;;  %v2290_v29 = vld [vmem:[#allocation2 + $0x4c] ss:$16 sps:$4 sm:$0xff]   ;;  %2820 = vst [vmem:[#allocation12_spill] sm:$0xff] %v2356_v42 }
  0x3f   :  { %496 = vmatprep.subr.bf16.mxu1 %v2195_v6  ;;  %189 = vmatpush1.bf16.msra.mxu0 %v1767_v14  ;;  %v2233_v17 = vld [vmem:[#allocation2 + $0x80] ss:$16 sps:$4 sm:$0xff]   ;;  %v2237_v18 = vld [vmem:[#allocation2 + $0xa4] ss:$16 sps:$4 sm:$0xff]   ;;  %v2296_v30 = vld [vmem:[#allocation2 + $0x48] ss:$16 sps:$4 sm:$0xff]  }
  0x40   :  { %605 = vmatprep.subr.bf16.mxu0 %v2191_v4  ;;  %v2243_v19 = vld [vmem:[#allocation2 + $0xa0] ss:$16 sps:$4 sm:$0xff]   ;;  %v2247_v20 = vld [vmem:[#allocation2 + $0xc4] ss:$16 sps:$4 sm:$0xff]   ;;  %v2300_v31 = vld [vmem:[#allocation2 + $0x6c] ss:$16 sps:$4 sm:$0xff]  }
  0x41   :  { %v2256_v22 = vld [vmem:[#allocation2 + $0xc0] ss:$16 sps:$4 sm:$0xff]   ;;  %v2260_v23 = vld [vmem:[#allocation2 + $0xe4] ss:$16 sps:$4 sm:$0xff]   ;;  %v2306_v32 = vld [vmem:[#allocation2 + $0x68] ss:$16 sps:$4 sm:$0xff]  }
  0x42   :  { %497 = vmatpush1.bf16.msra.mxu1 %v2200_v7  ;;  %1648 = vmatmul.mubr.msk.bf16.vlgmr.msra.gmra.mrb[0].mxu0 %vm175_vm0, %v1740_v3  ;;  %v2262_v24 = vld [vmem:[#allocation2 + $0xe0] ss:$16 sps:$4 sm:$0xff]   ;;  %v2310_v33 = vld [vmem:[#allocation2 + $0x8c] ss:$16 sps:$4 sm:$0xff]   ;;  %v2314_v34 = vld [vmem:[#allocation2 + $0x88] ss:$16 sps:$4 sm:$0xff]  }
  0x43   :  { %498 = vmatprep.subr.bf16.mxu1 %v2204_v8  ;;  %606 = vmatpush1.bf16.msra.mxu0 %v2193_v5  ;;  %v2318_v35 = vld [vmem:[#allocation2 + $0xac] ss:$16 sps:$4 sm:$0xff]   ;;  %v2321_v36 = vld [vmem:[#allocation2 + $0xa8] ss:$16 sps:$4 sm:$0xff]   ;;  %v125_v43 = vsub.s32 2, %v2356_v42  ;;  %v129_v45 = vsub.s32 3, %v2356_v42 }
  0x44   :  { %607 = vmatprep.subr.bf16.mxu0 %v2195_v6  ;;  %230 = vmatprep.mubr.bf16.mxu0 %v2816_v0  ;;  %v2324_v37 = vld [vmem:[#allocation2 + $0xcc] ss:$16 sps:$4 sm:$0xff]   ;;  %v2327_v38 = vld [vmem:[#allocation2 + $0xc8] ss:$16 sps:$4 sm:$0xff]   ;;  %v113_v44 = vld [vmem:[%s2809_s3] sm:$0xf] }
  0x45   :  { %1653 = vmatmul.mubr.msk.bf16.gmra.mrb[4].mxu1 %vm175_vm0, %v1747_v9  ;;  %v2330_v39 = vld [vmem:[#allocation2 + $0xec] ss:$16 sps:$4 sm:$0xff]   ;;  %v2333_v40 = vld [vmem:[#allocation2 + $0xe8] ss:$16 sps:$4 sm:$0xff]   ;;  %v2363_v46 = vrot.slane %v113_v44, %v125_v43  ;;  %v2369_v49 = vrot.slane %v113_v44, %v129_v45  ;;  %v2814_v62 = vsub.s32 0, %v2356_v42  ;;  %v2815_v63 = vsub.s32 1, %v2356_v42 }
  0x46   :  { %499 = vmatpush1.bf16.msra.mxu1 %v2210_v10  ;;  %313 = vmatprep.mubr.bf16.mxu1 %v2816_v0 }
  0x47   :  { %500 = vmatprep.subr.bf16.mxu1 %v2213_v11  ;;  %608 = vmatpush1.bf16.msra.mxu0 %v2200_v7  ;;  %v118_v3 = vrot.slane %v113_v44, %v2814_v62 }
  0x48   :  { %609 = vmatprep.subr.bf16.mxu0 %v2204_v8 }
  0x4a   :  { %501 = vmatpush1.bf16.msra.mxu1 %v2216_v12  ;;  %1649 = vmatmul.mubr.msk.bf16.gmra.mrb[4].mxu0 %vm175_vm0, %v1747_v9 }
  0x4b   :  { %502 = vmatprep.subr.bf16.mxu1 %v2227_v15  ;;  %610 = vmatpush1.bf16.msra.mxu0 %v2210_v10 }
  0x4c   :  { %611 = vmatprep.subr.bf16.mxu0 %v2213_v11  ;;  %240 = vmatprep.mubr.bf16.mxu0 %v2816_v0 }
  0x4d   :  { %1654 = vmatmul.mubr.msk.bf16.gmra.mrb[8].mxu1 %vm175_vm0, %v1754_v16 }
  0x4e   :  { %503 = vmatpush1.bf16.msra.mxu1 %v2233_v17  ;;  %323 = vmatprep.mubr.bf16.mxu1 %v2816_v0 }
  0x4f   :  { %504 = vmatprep.subr.bf16.mxu1 %v2237_v18  ;;  %612 = vmatpush1.bf16.msra.mxu0 %v2216_v12 }
  0x50   :  { %613 = vmatprep.subr.bf16.mxu0 %v2227_v15 }
  0x52   :  { %505 = vmatpush1.bf16.msra.mxu1 %v2243_v19  ;;  %1650 = vmatmul.mubr.msk.bf16.gmra.mrb[8].mxu0 %vm175_vm0, %v1754_v16  ;;  %v122_v16 = vrot.slane %v113_v44, %v2815_v63 }
  0x53   :  { %506 = vmatprep.subr.bf16.mxu1 %v2247_v20  ;;  %614 = vmatpush1.bf16.msra.mxu0 %v2233_v17 }
  0x54   :  { %615 = vmatprep.subr.bf16.mxu0 %v2237_v18  ;;  %250 = vmatprep.mubr.bf16.mxu0 %v2816_v0 }
  0x55   :  { %1655 = vmatmul.mubr.msk.bf16.gmra.mrb[12].mxu1 %vm175_vm0, %v1761_v21 }
  0x56   :  { %507 = vmatpush1.bf16.msra.mxu1 %v2256_v22  ;;  %526 = vmatprep.mubr.bf16.mxu1 %v2816_v0 }
  0x57   :  { %508 = vmatprep.subr.bf16.mxu1 %v2260_v23  ;;  %616 = vmatpush1.bf16.msra.mxu0 %v2243_v19 }
  0x58   :  { %617 = vmatprep.subr.bf16.mxu0 %v2247_v20 }
  0x5a   :  { %509 = vmatpush1.bf16.msra.mxu1 %v2262_v24  ;;  %1651 = vmatmul.mubr.msk.bf16.gmra.mrb[12].mxu0 %vm175_vm0, %v1761_v21 }
  0x5b   :  { %535 = vmatprep.subr.bf16.mxu1 %v2266_v25  ;;  %618 = vmatpush1.bf16.msra.mxu0 %v2256_v22 }
  0x5c   :  { %637 = vmatprep.mubr.bf16.mxu0 %v2816_v0  ;;  %619 = vmatprep.subr.bf16.mxu0 %v2260_v23 }
  0x5d   :  { %527 = vmatmul.mubr.bf16.vlgmr.msra.gmra.mrb[16].mxu1 %v2816_v0 }
  0x5e   :  { %536 = vmatpush1.bf16.msra.mxu1 %v2276_v26  ;;  %567 = vmatprep.mubr.bf16.mxu1 %v2816_v0 }
  0x5f   :  { %537 = vmatprep.subr.bf16.mxu1 %v2280_v27  ;;  %620 = vmatpush1.bf16.msra.mxu0 %v2262_v24 }
  0x60   :  { %716 = vmatprep.subr.bf16.mxu0 %v2191_v4 }
  0x62   :  { %538 = vmatpush1.bf16.msra.mxu1 %v2286_v28 }
  0x63   :  { %539 = vmatprep.subr.bf16.mxu1 %v2290_v29 }
  0x66   :  { %540 = vmatpush1.bf16.msra.mxu1 %v2296_v30 }
  0x67   :  { %541 = vmatprep.subr.bf16.mxu1 %v2300_v31 }
  0x6a   :  { %542 = vmatpush1.bf16.msra.mxu1 %v2306_v32 }
  0x6b   :  { %543 = vmatprep.subr.bf16.mxu1 %v2310_v33 }
  0x6e   :  { %544 = vmatpush1.bf16.msra.mxu1 %v2314_v34 }
  0x6f   :  { %545 = vmatprep.subr.bf16.mxu1 %v2318_v35 }
  0x72   :  { %546 = vmatpush1.bf16.msra.mxu1 %v2321_v36 }
  0x73   :  { %547 = vmatprep.subr.bf16.mxu1 %v2324_v37 }
  0x76   :  { %548 = vmatpush1.bf16.msra.mxu1 %v2327_v38 }
  0x77   :  { %549 = vmatprep.subr.bf16.mxu1 %v2330_v39 }
  0x7a   :  { %550 = vmatpush1.bf16.msra.mxu1 %v2333_v40 }
  0x7b   :  { %646 = vmatprep.subr.bf16.mxu1 %v2266_v25 }
  0x7d   :  { %568 = vmatmul.mubr.bf16.vlgmr.msra.gmra.mrb[20].mxu1 %v2816_v0 }
  0x7e   :  { %647 = vmatpush1.bf16.msra.mxu1 %v2276_v26  ;;  %678 = vmatprep.mubr.bf16.mxu1 %v2816_v0 }
  0x7f   :  { %648 = vmatprep.subr.bf16.mxu1 %v2280_v27 }
  0x82   :  { %649 = vmatpush1.bf16.msra.mxu1 %v2286_v28 }
  0x83   :  { %650 = vmatprep.subr.bf16.mxu1 %v2290_v29 }
  0x86   :  { %651 = vmatpush1.bf16.msra.mxu1 %v2296_v30 }
  0x87   :  { %652 = vmatprep.subr.bf16.mxu1 %v2300_v31 }
  0x8a   :  { %653 = vmatpush1.bf16.msra.mxu1 %v2306_v32 }
  0x8b   :  { %654 = vmatprep.subr.bf16.mxu1 %v2310_v33 }
  0x8e   :  { %655 = vmatpush1.bf16.msra.mxu1 %v2314_v34 }
  0x8f   :  { %656 = vmatprep.subr.bf16.mxu1 %v2318_v35 }
  0x92   :  { %657 = vmatpush1.bf16.msra.mxu1 %v2321_v36 }
  0x93   :  { %658 = vmatprep.subr.bf16.mxu1 %v2324_v37 }
  0x96   :  { %659 = vmatpush1.bf16.msra.mxu1 %v2327_v38 }
  0x97   :  { %660 = vmatprep.subr.bf16.mxu1 %v2330_v39 }
  0x9a   :  { %661 = vmatpush1.bf16.msra.mxu1 %v2333_v40 }
  0x9b   :  { %757 = vmatprep.subr.bf16.mxu1 %v2266_v25 }
 0x110   :  { %v2365_v47 = vpop.f32.mrb[0].mxu1 }
 0x111   :  { %v2367_v48 = vpop.f32.mrb[1].mxu1 }
 0x112   :  { %v299_v50 = vpop.f32.mrb[2].mxu1 }
 0x113   :  { %v2372_v51 = vadd.f32 %v299_v50, %v2363_v46  ;;  %v301_v52 = vpop.f32.mrb[3].mxu1 }
 0x114   :  { %v2375_v53 = vadd.f32 %v301_v52, %v2369_v49 }
 0x115   :  { %v222_v1 = vpop.f32.mrb[0].mxu0 }
 0x116   :  { %v224_v9 = vpop.f32.mrb[1].mxu0 }
 0x117   :  { %v226_v21 = vpop.f32.mrb[2].mxu0 }
 0x118   :  { %v305_v54 = vpop.f32.mrb[4].mxu1  ;;  %v2401_v45 = vadd.f32 %v226_v21, %v118_v3  ;;  %v228_v50 = vpop.f32.mrb[3].mxu0 }
 0x119   :  { %v2378_v55 = vadd.f32 %v305_v54, %v2363_v46  ;;  %v307_v56 = vpop.f32.mrb[5].mxu1 }
 0x11a   :  { %v2381_v57 = vadd.f32 %v307_v56, %v2369_v49  ;;  %v309_v58 = vpop.f32.mrb[6].mxu1  ;;  %v2406_v56 = vadd.f32 %v228_v50, %v122_v16 }
 0x11b   :  { %v2384_v59 = vadd.f32 %v309_v58, %v2363_v46  ;;  %v311_v60 = vpop.f32.mrb[7].mxu1 }
 0x11c   :  { %2821 = vst [vmem:[#allocation13_spill] sm:$0xff] %v2381_v57  ;;  %v2387_v61 = vadd.f32 %v311_v60, %v2369_v49 }
 0x11d   :  { %2822 = vst [vmem:[#allocation14_spill] sm:$0xff] %v2384_v59  ;;  %v232_v60 = vpop.f32.mrb[4].mxu0 }
 0x11e   :  { %2823 = vst [vmem:[#allocation15_spill] sm:$0xff] %v2387_v61  ;;  %v2411_v44 = vadd.f32 %v232_v60, %v118_v3  ;;  %v234_v62 = vpop.f32.mrb[5].mxu0 }
 0x11f   :  { %v2416_v63 = vadd.f32 %v234_v62, %v122_v16  ;;  %v236_v0 = vpop.f32.mrb[6].mxu0  ;;  %v225_v62 = vadd.f32 %v224_v9, %v122_v16 }
 0x120   :  { %v315_v2 = vpop.f32.mrb[8].mxu1  ;;  %v2421_v42 = vadd.f32 %v236_v0, %v118_v3 }
 0x121   :  { %v2394_v13 = vadd.f32 %v315_v2, %v2363_v46  ;;  %v317_v14 = vpop.f32.mrb[9].mxu1 }
 0x122   :  { %v2399_v41 = vadd.f32 %v317_v14, %v2369_v49  ;;  %v319_v43 = vpop.f32.mrb[10].mxu1  ;;  %2830 = vst [vmem:[#allocation22_spill] sm:$0xff] %v2421_v42 }
 0x123   :  { %2824 = vst [vmem:[#allocation16_spill] sm:$0xff] %v2394_v13  ;;  %v2404_v52 = vadd.f32 %v319_v43, %v2363_v46  ;;  %v321_v54 = vpop.f32.mrb[11].mxu1 }
 0x124   :  { %2825 = vst [vmem:[#allocation17_spill] sm:$0xff] %v2399_v41  ;;  %v2409_v58 = vadd.f32 %v321_v54, %v2369_v49  ;;  %v238_v54 = vpop.f32.mrb[7].mxu0 }
 0x125   :  { %2826 = vst [vmem:[#allocation18_spill] sm:$0xff] %v2404_v52  ;;  %v2426_v52 = vadd.f32 %v238_v54, %v122_v16  ;;  %v242_v41 = vpop.f32.mrb[8].mxu0 }
 0x126   :  { %2827 = vst [vmem:[#allocation19_spill] sm:$0xff] %v2409_v58  ;;  %v2431_v61 = vadd.f32 %v242_v41, %v118_v3 }
 0x127   :  { %2832 = vst [vmem:[#allocation24_spill] sm:$0xff] %v2426_v52 }
 0x128   :  { %v325_v2 = vpop.f32.mrb[12].mxu1  ;;  %2834 = vst [vmem:[#allocation26_spill] sm:$0xff] %v2431_v61 }
 0x129   :  { %v2414_v14 = vadd.f32 %v325_v2, %v2363_v46  ;;  %v327_v21 = vpop.f32.mrb[13].mxu1 }
 0x12a   :  { %v2419_v43 = vadd.f32 %v327_v21, %v2369_v49  ;;  %v329_v50 = vpop.f32.mrb[14].mxu1  ;;  %v244_v21 = vpop.f32.mrb[9].mxu0 }
 0x12b   :  { %2828 = vst [vmem:[#allocation20_spill] sm:$0xff] %v2414_v14  ;;  %v2424_v58 = vadd.f32 %v329_v50, %v2363_v46  ;;  %v331_v60 = vpop.f32.mrb[15].mxu1  ;;  %v223_v14 = vadd.f32 %v222_v1, %v118_v3  ;;  %v2433_v59 = vadd.f32 %v244_v21, %v122_v16  ;;  %v246_v42 = vpop.f32.mrb[10].mxu0 }
 0x12c   :  { %2829 = vst [vmem:[#allocation21_spill] sm:$0xff] %v2419_v43  ;;  %v2429_v2 = vadd.f32 %v331_v60, %v2369_v49  ;;  %v2435_v57 = vadd.f32 %v246_v42, %v118_v3  ;;  %v248_v54 = vpop.f32.mrb[11].mxu0 }
 0x12d   :  { %2831 = vst [vmem:[#allocation23_spill] sm:$0xff] %v2424_v58  ;;  %v2437_v60 = vadd.f32 %v248_v54, %v122_v16  ;;  %v252_v1 = vpop.f32.mrb[12].mxu0  ;;  %v296_v54 = vadd.f32 %v2365_v47, %v2363_v46 }
 0x12e   :  { %2833 = vst [vmem:[#allocation25_spill] sm:$0xff] %v2429_v2  ;;  %v2439_v9 = vadd.f32 %v252_v1, %v118_v3  ;;  %v254_v2 = vpop.f32.mrb[13].mxu0 }
 0x12f   :  { %v2441_v41 = vadd.f32 %v254_v2, %v122_v16  ;;  %v256_v61 = vpop.f32.mrb[14].mxu0  ;;  %v298_v2 = vadd.f32 %v2367_v48, %v2369_v49 }
 0x130   :  { %v528_v13 = vpop.f32.mrb[16].mxu1 }
 0x131   :  { %v576_v43 = vadd.f32 %v528_v13, %v223_v14  ;;  %v530_v0 = vpop.f32.mrb[17].mxu1  ;;  %2835 = vst [vmem:[#allocation27_spill] sm:$0xff] %v2441_v41  ;;  %v2443_v13 = vadd.f32 %v256_v61, %v118_v3  ;;  %v258_v14 = vpop.f32.mrb[15].mxu0 }
 0x132   :  { %v577_v50 = vadd.f32 %v530_v0, %v225_v62  ;;  %v532_v58 = vpop.f32.mrb[18].mxu1  ;;  %v2445_v21 = vadd.f32 %v258_v14, %v122_v16 }
 0x133   :  { %v533_v52 = vpop.f32.mrb[19].mxu1  ;;  %2836 = vst [vmem:[#allocation28_spill] sm:$0xff] %v2443_v13  ;;  %v1688_v58 = vmul.f32 -1.442695, %v576_v43 }
 0x134   :  { %2837 = vst [vmem:[#allocation29_spill] sm:$0xff] %v2445_v21  ;;  %v1689_v62 = vmul.f32 -1.442695, %v577_v50 }
 0x136   :  { %1819 = vpow2.f32 %v1689_v62 }
 0x137   :  { %1821 = vpow2.f32 %v1688_v58 }
 0x140   :  { %v1820_v42 = vpop.eup %1819 }
 0x141   :  { %v1822_v52 = vpop.eup %1821  ;;  %v590_v0 = vadd.f32 1.0, %v1820_v42 }
 0x142   :  { %v589_v1 = vadd.f32 1.0, %v1822_v52 }
 0x143   :  { %1823 = vrcp.f32 %v590_v0 }
 0x144   :  { %1825 = vrcp.f32 %v589_v1 }
 0x14d   :  { %v1824_v62 = vpop.eup %1823 }
 0x14e   :  { %v1826_v58 = vpop.eup %1825  ;;  %v599_v46 = vmul.f32 0.0, %v1824_v62 }
 0x150   :  { %v569_v41 = vpop.f32.mrb[20].mxu1 }
 0x151   :  { %v578_v61 = vadd.f32 %v569_v41, %v296_v54  ;;  %v571_v3 = vpop.f32.mrb[21].mxu1 }
 0x152   :  { %v579_v16 = vadd.f32 %v571_v3, %v298_v2  ;;  %v573_v14 = vpop.f32.mrb[22].mxu1 }
 0x153   :  { %v1690_v43 = vmul.f32 -1.442695, %v578_v61  ;;  %v574_v50 = vpop.f32.mrb[23].mxu1 }
 0x154   :  { %1827 = vtanh.f32 %v579_v16 }
 0x155   :  { %1829 = vpow2.f32 %v1690_v43 }
 0x15e   :  { %v1828_v42 = vpop.eup %1827 }
 0x15f   :  { %v1830_v21 = vpop.eup %1829  ;;  %v600_v47 = vmul.f32 %v1828_v42, %v1826_v58 }
 0x160   :  { %v591_v52 = vadd.f32 1.0, %v1830_v21  ;;  %v2838_v21 = vmov 0  }
 0x161   :  { %v2451_v13 = vadd.f32 %v600_v47, %v599_v46 }
 0x162   :  { %1831 = vrcp.f32 %v591_v52 }
 0x163   :  { %1833 = vtanh.f32 %v2451_v13 }
 0x16c   :  { %v1832_v48 = vpop.eup %1831 }
 0x16d   :  { %v1834_v49 = vpop.eup %1833 }
 0x16e   :  { %v2454_v41 = vmul.f32 %v1834_v49, %v1832_v48 }
 0x170   :  { %v604_v0 = vpack.c.bf16 %v2454_v41, %v2454_v41 }
 0x172   :  { %638 = vmatmul.mubr.bf16.vlgmr.msra.gmra.mrb[16].mxu0 %v604_v0  ;;  %679 = vmatmul.mubr.bf16.vlgmr.msra.gmra.mrb[24].mxu1 %v604_v0 }
 0x173   :  { %717 = vmatpush1.bf16.msra.mxu0 %v2193_v5  ;;  %758 = vmatpush1.bf16.msra.mxu1 %v2276_v26 }
 0x174   :  { %718 = vmatprep.subr.bf16.mxu0 %v2195_v6  ;;  %759 = vmatprep.subr.bf16.mxu1 %v2280_v27 }
 0x175   :  { %748 = vmatprep.mubr.bf16.mxu0 %v2838_v21  ;;  %789 = vmatprep.mubr.bf16.mxu1 %v2838_v21 }
 0x177   :  { %719 = vmatpush1.bf16.msra.mxu0 %v2200_v7  ;;  %760 = vmatpush1.bf16.msra.mxu1 %v2286_v28 }
 0x178   :  { %720 = vmatprep.subr.bf16.mxu0 %v2204_v8  ;;  %761 = vmatprep.subr.bf16.mxu1 %v2290_v29 }
 0x17b   :  { %721 = vmatpush1.bf16.msra.mxu0 %v2210_v10  ;;  %762 = vmatpush1.bf16.msra.mxu1 %v2296_v30 }
 0x17c   :  { %722 = vmatprep.subr.bf16.mxu0 %v2213_v11  ;;  %763 = vmatprep.subr.bf16.mxu1 %v2300_v31 }
 0x17f   :  { %723 = vmatpush1.bf16.msra.mxu0 %v2216_v12  ;;  %764 = vmatpush1.bf16.msra.mxu1 %v2306_v32 }
 0x180   :  { %724 = vmatprep.subr.bf16.mxu0 %v2227_v15  ;;  %765 = vmatprep.subr.bf16.mxu1 %v2310_v33 }
 0x183   :  { %725 = vmatpush1.bf16.msra.mxu0 %v2233_v17  ;;  %766 = vmatpush1.bf16.msra.mxu1 %v2314_v34 }
 0x184   :  { %726 = vmatprep.subr.bf16.mxu0 %v2237_v18  ;;  %767 = vmatprep.subr.bf16.mxu1 %v2318_v35 }
 0x187   :  { %727 = vmatpush1.bf16.msra.mxu0 %v2243_v19  ;;  %768 = vmatpush1.bf16.msra.mxu1 %v2321_v36 }
 0x188   :  { %728 = vmatprep.subr.bf16.mxu0 %v2247_v20  ;;  %769 = vmatprep.subr.bf16.mxu1 %v2324_v37 }
 0x18b   :  { %729 = vmatpush1.bf16.msra.mxu0 %v2256_v22  ;;  %770 = vmatpush1.bf16.msra.mxu1 %v2327_v38 }
 0x18c   :  { %730 = vmatprep.subr.bf16.mxu0 %v2260_v23  ;;  %771 = vmatprep.subr.bf16.mxu1 %v2330_v39 }
 0x18f   :  { %731 = vmatpush1.bf16.msra.mxu0 %v2262_v24  ;;  %772 = vmatpush1.bf16.msra.mxu1 %v2333_v40 }
 0x190   :  { %827 = vmatprep.subr.bf16.mxu0 %v2191_v4  ;;  %868 = vmatprep.subr.bf16.mxu1 %v2266_v25 }
 0x245   :  { %v639_v54 = vpop.f32.mrb[16].mxu0  ;;  %v680_v1 = vpop.f32.mrb[24].mxu1 }
 0x246   :  { %v687_v2 = vadd.f32 %v639_v54, %v2401_v45  ;;  %v689_v61 = vadd.f32 %v680_v1, %v2372_v51  ;;  %v641_v3 = vpop.f32.mrb[17].mxu0  ;;  %v682_v16 = vpop.f32.mrb[25].mxu1 }
 0x247   :  { %v688_v14 = vadd.f32 %v641_v3, %v2406_v56  ;;  %v690_v43 = vadd.f32 %v682_v16, %v2375_v53  ;;  %v643_v50 = vpop.f32.mrb[18].mxu0  ;;  %v684_v62 = vpop.f32.mrb[26].mxu1 }
 0x248   :  { %v1691_v58 = vmul.f32 -1.442695, %v687_v2  ;;  %v644_v42 = vpop.f32.mrb[19].mxu0  ;;  %v685_v46 = vpop.f32.mrb[27].mxu1  ;;  %v1693_v52 = vmul.f32 -1.442695, %v689_v61 }
 0x249   :  { %v1692_v47 = vmul.f32 -1.442695, %v688_v14 }
 0x24a   :  { %1835 = vpow2.f32 %v1691_v58 }
 0x24b   :  { %1837 = vpow2.f32 %v1692_v47 }
 0x24c   :  { %1839 = vtanh.f32 %v690_v43 }
 0x24d   :  { %1841 = vpow2.f32 %v1693_v52 }
 0x254   :  { %v1836_v48 = vpop.eup %1835 }
 0x255   :  { %v700_v49 = vadd.f32 1.0, %v1836_v48  ;;  %v1838_v45 = vpop.eup %1837  ;;  %v2839_v48 = vld [vmem:[#allocation13_spill] sm:$0xff] }
 0x256   :  { %v701_v51 = vadd.f32 1.0, %v1838_v45  ;;  %v1840_v56 = vpop.eup %1839 }
 0x257   :  { %1843 = vrcp.f32 %v700_v49  ;;  %v1842_v0 = vpop.eup %1841 }
 0x258   :  { %1845 = vrcp.f32 %v701_v51  ;;  %v702_v2 = vadd.f32 1.0, %v1842_v0 }
 0x25a   :  { %1847 = vrcp.f32 %v702_v2 }
 0x261   :  { %v1844_v53 = vpop.eup %1843 }
 0x262   :  { %v711_v54 = vmul.f32 %v1844_v53, %v1840_v56  ;;  %v1846_v1 = vpop.eup %1845 }
 0x263   :  { %v710_v3 = vmul.f32 %v1846_v1, %v2451_v13 }
 0x264   :  { %v1848_v61 = vpop.eup %1847 }
 0x265   :  { %v2497_v16 = vadd.f32 %v711_v54, %v710_v3 }
 0x267   :  { %1849 = vtanh.f32 %v2497_v16 }
 0x271   :  { %v1850_v14 = vpop.eup %1849 }
 0x272   :  { %v2500_v43 = vmul.f32 %v1850_v14, %v1848_v61 }
 0x274   :  { %v715_v50 = vpack.c.bf16 %v2500_v43, %v2500_v43 }
 0x276   :  { %749 = vmatmul.mubr.bf16.vlgmr.msra.gmra.mrb[20].mxu0 %v715_v50  ;;  %790 = vmatmul.mubr.bf16.vlgmr.msra.gmra.mrb[28].mxu1 %v715_v50 }
 0x277   :  { %828 = vmatpush1.bf16.msra.mxu0 %v2193_v5  ;;  %869 = vmatpush1.bf16.msra.mxu1 %v2276_v26 }
 0x278   :  { %829 = vmatprep.subr.bf16.mxu0 %v2195_v6  ;;  %870 = vmatprep.subr.bf16.mxu1 %v2280_v27 }
 0x279   :  { %859 = vmatprep.mubr.bf16.mxu0 %v2838_v21  ;;  %900 = vmatprep.mubr.bf16.mxu1 %v2838_v21 }
 0x27b   :  { %830 = vmatpush1.bf16.msra.mxu0 %v2200_v7  ;;  %871 = vmatpush1.bf16.msra.mxu1 %v2286_v28 }
 0x27c   :  { %831 = vmatprep.subr.bf16.mxu0 %v2204_v8  ;;  %872 = vmatprep.subr.bf16.mxu1 %v2290_v29 }
 0x27f   :  { %832 = vmatpush1.bf16.msra.mxu0 %v2210_v10  ;;  %873 = vmatpush1.bf16.msra.mxu1 %v2296_v30 }
 0x280   :  { %833 = vmatprep.subr.bf16.mxu0 %v2213_v11  ;;  %874 = vmatprep.subr.bf16.mxu1 %v2300_v31 }
 0x283   :  { %834 = vmatpush1.bf16.msra.mxu0 %v2216_v12  ;;  %875 = vmatpush1.bf16.msra.mxu1 %v2306_v32 }
 0x284   :  { %835 = vmatprep.subr.bf16.mxu0 %v2227_v15  ;;  %876 = vmatprep.subr.bf16.mxu1 %v2310_v33 }
 0x287   :  { %836 = vmatpush1.bf16.msra.mxu0 %v2233_v17  ;;  %877 = vmatpush1.bf16.msra.mxu1 %v2314_v34 }
 0x288   :  { %837 = vmatprep.subr.bf16.mxu0 %v2237_v18  ;;  %878 = vmatprep.subr.bf16.mxu1 %v2318_v35 }
 0x28b   :  { %838 = vmatpush1.bf16.msra.mxu0 %v2243_v19  ;;  %879 = vmatpush1.bf16.msra.mxu1 %v2321_v36 }
 0x28c   :  { %839 = vmatprep.subr.bf16.mxu0 %v2247_v20  ;;  %880 = vmatprep.subr.bf16.mxu1 %v2324_v37 }
 0x28f   :  { %840 = vmatpush1.bf16.msra.mxu0 %v2256_v22  ;;  %881 = vmatpush1.bf16.msra.mxu1 %v2327_v38 }
 0x290   :  { %841 = vmatprep.subr.bf16.mxu0 %v2260_v23  ;;  %882 = vmatprep.subr.bf16.mxu1 %v2330_v39 }
 0x293   :  { %842 = vmatpush1.bf16.msra.mxu0 %v2262_v24  ;;  %883 = vmatpush1.bf16.msra.mxu1 %v2333_v40 }
 0x294   :  { %938 = vmatprep.subr.bf16.mxu0 %v2191_v4  ;;  %979 = vmatprep.subr.bf16.mxu1 %v2266_v25 }
 0x349   :  { %v750_v13 = vpop.f32.mrb[20].mxu0  ;;  %v791_v62 = vpop.f32.mrb[28].mxu1 }
 0x34a   :  { %v798_v58 = vadd.f32 %v750_v13, %v2411_v44  ;;  %v800_v42 = vadd.f32 %v791_v62, %v2378_v55  ;;  %v752_v46 = vpop.f32.mrb[21].mxu0  ;;  %v793_v47 = vpop.f32.mrb[29].mxu1 }
 0x34b   :  { %v799_v52 = vadd.f32 %v752_v46, %v2416_v63  ;;  %v801_v49 = vadd.f32 %v793_v47, %v2839_v48  ;;  %v754_v45 = vpop.f32.mrb[22].mxu0  ;;  %v795_v51 = vpop.f32.mrb[30].mxu1 }
 0x34c   :  { %v1694_v56 = vmul.f32 -1.442695, %v798_v58  ;;  %v755_v0 = vpop.f32.mrb[23].mxu0  ;;  %v796_v53 = vpop.f32.mrb[31].mxu1  ;;  %v1696_v1 = vmul.f32 -1.442695, %v800_v42 }
 0x34d   :  { %v1695_v54 = vmul.f32 -1.442695, %v799_v52  ;;  %v2842_v0 = vld [vmem:[#allocation24_spill] sm:$0xff] }
 0x34e   :  { %1851 = vpow2.f32 %v1694_v56 }
 0x34f   :  { %1853 = vpow2.f32 %v1695_v54  ;;  %v2843_v54 = vld [vmem:[#allocation15_spill] sm:$0xff] }
 0x350   :  { %1855 = vtanh.f32 %v801_v49  ;;  %v2841_v49 = vld [vmem:[#allocation14_spill] sm:$0xff] }
 0x351   :  { %1857 = vpow2.f32 %v1696_v1 }
 0x358   :  { %v1852_v2 = vpop.eup %1851 }
 0x359   :  { %v811_v3 = vadd.f32 1.0, %v1852_v2  ;;  %v1854_v44 = vpop.eup %1853 }
 0x35a   :  { %v812_v55 = vadd.f32 1.0, %v1854_v44  ;;  %v1856_v63 = vpop.eup %1855 }
 0x35b   :  { %1859 = vrcp.f32 %v811_v3  ;;  %v1858_v61 = vpop.eup %1857 }
 0x35c   :  { %1861 = vrcp.f32 %v812_v55  ;;  %v813_v62 = vadd.f32 1.0, %v1858_v61 }
 0x35e   :  { %1863 = vrcp.f32 %v813_v62 }
 0x365   :  { %v1860_v14 = vpop.eup %1859 }
 0x366   :  { %v822_v50 = vmul.f32 %v1860_v14, %v1856_v63  ;;  %v1862_v13 = vpop.eup %1861 }
 0x367   :  { %v821_v58 = vmul.f32 %v1862_v13, %v2497_v16 }
 0x368   :  { %v1864_v42 = vpop.eup %1863 }
 0x369   :  { %v2543_v46 = vadd.f32 %v822_v50, %v821_v58 }
 0x36b   :  { %1865 = vtanh.f32 %v2543_v46 }
 0x375   :  { %v1866_v47 = vpop.eup %1865 }
 0x376   :  { %v2546_v52 = vmul.f32 %v1866_v47, %v1864_v42 }
 0x378   :  { %v826_v48 = vpack.c.bf16 %v2546_v52, %v2546_v52 }
 0x37a   :  { %860 = vmatmul.mubr.bf16.vlgmr.msra.gmra.mrb[24].mxu0 %v826_v48  ;;  %901 = vmatmul.mubr.bf16.vlgmr.msra.gmra.mrb[32].mxu1 %v826_v48 }
 0x37b   :  { %939 = vmatpush1.bf16.msra.mxu0 %v2193_v5  ;;  %980 = vmatpush1.bf16.msra.mxu1 %v2276_v26 }
 0x37c   :  { %940 = vmatprep.subr.bf16.mxu0 %v2195_v6  ;;  %981 = vmatprep.subr.bf16.mxu1 %v2280_v27 }
 0x37d   :  { %970 = vmatprep.mubr.bf16.mxu0 %v2838_v21  ;;  %1011 = vmatprep.mubr.bf16.mxu1 %v2838_v21 }
 0x37f   :  { %941 = vmatpush1.bf16.msra.mxu0 %v2200_v7  ;;  %982 = vmatpush1.bf16.msra.mxu1 %v2286_v28  ;;  %v2840_v7 = vld [vmem:[#allocation22_spill] sm:$0xff] }
 0x380   :  { %942 = vmatprep.subr.bf16.mxu0 %v2204_v8  ;;  %983 = vmatprep.subr.bf16.mxu1 %v2290_v29 }
 0x383   :  { %943 = vmatpush1.bf16.msra.mxu0 %v2210_v10  ;;  %984 = vmatpush1.bf16.msra.mxu1 %v2296_v30 }
 0x384   :  { %944 = vmatprep.subr.bf16.mxu0 %v2213_v11  ;;  %985 = vmatprep.subr.bf16.mxu1 %v2300_v31 }
 0x387   :  { %945 = vmatpush1.bf16.msra.mxu0 %v2216_v12  ;;  %986 = vmatpush1.bf16.msra.mxu1 %v2306_v32 }
 0x388   :  { %946 = vmatprep.subr.bf16.mxu0 %v2227_v15  ;;  %987 = vmatprep.subr.bf16.mxu1 %v2310_v33 }
 0x38b   :  { %947 = vmatpush1.bf16.msra.mxu0 %v2233_v17  ;;  %988 = vmatpush1.bf16.msra.mxu1 %v2314_v34 }
 0x38c   :  { %948 = vmatprep.subr.bf16.mxu0 %v2237_v18  ;;  %989 = vmatprep.subr.bf16.mxu1 %v2318_v35 }
 0x38f   :  { %949 = vmatpush1.bf16.msra.mxu0 %v2243_v19  ;;  %990 = vmatpush1.bf16.msra.mxu1 %v2321_v36 }
 0x390   :  { %950 = vmatprep.subr.bf16.mxu0 %v2247_v20  ;;  %991 = vmatprep.subr.bf16.mxu1 %v2324_v37 }
 0x393   :  { %951 = vmatpush1.bf16.msra.mxu0 %v2256_v22  ;;  %992 = vmatpush1.bf16.msra.mxu1 %v2327_v38 }
 0x394   :  { %952 = vmatprep.subr.bf16.mxu0 %v2260_v23  ;;  %993 = vmatprep.subr.bf16.mxu1 %v2330_v39 }
 0x397   :  { %953 = vmatpush1.bf16.msra.mxu0 %v2262_v24  ;;  %994 = vmatpush1.bf16.msra.mxu1 %v2333_v40 }
 0x398   :  { %1049 = vmatprep.subr.bf16.mxu0 %v2191_v4  ;;  %1090 = vmatprep.subr.bf16.mxu1 %v2266_v25 }
 0x44d   :  { %v861_v5 = vpop.f32.mrb[24].mxu0  ;;  %v902_v6 = vpop.f32.mrb[32].mxu1 }
 0x44e   :  { %v909_v16 = vadd.f32 %v861_v5, %v2840_v7  ;;  %v911_v45 = vadd.f32 %v902_v6, %v2841_v49  ;;  %v863_v51 = vpop.f32.mrb[25].mxu0  ;;  %v904_v56 = vpop.f32.mrb[33].mxu1 }
 0x44f   :  { %v910_v53 = vadd.f32 %v863_v51, %v2842_v0  ;;  %v912_v1 = vadd.f32 %v904_v56, %v2843_v54  ;;  %v865_v2 = vpop.f32.mrb[26].mxu0  ;;  %v906_v3 = vpop.f32.mrb[34].mxu1  ;;  %v2596_v0 = vld [vmem:[#allocation2] ss:$16 sps:$4 sm:$0xff]  }
 0x450   :  { %v1697_v44 = vmul.f32 -1.442695, %v909_v16  ;;  %v866_v55 = vpop.f32.mrb[27].mxu0  ;;  %v907_v63 = vpop.f32.mrb[35].mxu1  ;;  %v1699_v61 = vmul.f32 -1.442695, %v911_v45 }
 0x451   :  { %v1698_v4 = vmul.f32 -1.442695, %v910_v53  ;;  %v2606_v53 = vld [vmem:[#allocation2 + $0x20] ss:$16 sps:$4 sm:$0xff]  }
 0x452   :  { %1867 = vpow2.f32 %v1697_v44 }
 0x453   :  { %1869 = vpow2.f32 %v1698_v4 }
 0x454   :  { %1871 = vtanh.f32 %v912_v1 }
 0x455   :  { %1873 = vpow2.f32 %v1699_v61 }
 0x45c   :  { %v1868_v14 = vpop.eup %1867 }
 0x45d   :  { %v922_v50 = vadd.f32 1.0, %v1868_v14  ;;  %v1870_v13 = vpop.eup %1869 }
 0x45e   :  { %v923_v62 = vadd.f32 1.0, %v1870_v13  ;;  %v1872_v58 = vpop.eup %1871 }
 0x45f   :  { %1875 = vrcp.f32 %v922_v50  ;;  %v1874_v42 = vpop.eup %1873 }
 0x460   :  { %1877 = vrcp.f32 %v923_v62  ;;  %v924_v6 = vadd.f32 1.0, %v1874_v42 }
 0x462   :  { %1879 = vrcp.f32 %v924_v6 }
 0x469   :  { %v1876_v47 = vpop.eup %1875 }
 0x46a   :  { %v933_v48 = vmul.f32 %v1876_v47, %v1872_v58  ;;  %v1878_v5 = vpop.eup %1877 }
 0x46b   :  { %v932_v7 = vmul.f32 %v1878_v5, %v2543_v46  ;;  %v2600_v46 = vld [vmem:[#allocation2 + $0x24] ss:$16 sps:$4 sm:$0xff]  }
 0x46c   :  { %v1880_v49 = vpop.eup %1879 }
 0x46d   :  { %v2589_v16 = vadd.f32 %v933_v48, %v932_v7 }
 0x46f   :  { %1881 = vtanh.f32 %v2589_v16 }
 0x479   :  { %v1882_v45 = vpop.eup %1881 }
 0x47a   :  { %v2592_v51 = vmul.f32 %v1882_v45, %v1880_v49  ;;  %v2662_v45 = vld [vmem:[#allocation2 + $0x40] ss:$16 sps:$4 sm:$0xff]  }
 0x47c   :  { %v937_v56 = vpack.c.bf16 %v2592_v51, %v2592_v51 }
 0x47e   :  { %971 = vmatmul.mubr.bf16.vlgmr.msra.gmra.mrb[28].mxu0 %v937_v56  ;;  %1012 = vmatmul.mubr.bf16.vlgmr.msra.gmra.mrb[36].mxu1 %v937_v56 }
 0x47f   :  { %1050 = vmatpush1.bf16.msra.mxu0 %v2596_v0  ;;  %1091 = vmatpush1.bf16.msra.mxu1 %v2276_v26 }
 0x480   :  { %1051 = vmatprep.subr.bf16.mxu0 %v2600_v46  ;;  %1092 = vmatprep.subr.bf16.mxu1 %v2280_v27 }
 0x481   :  { %1081 = vmatprep.mubr.bf16.mxu0 %v2838_v21  ;;  %1122 = vmatprep.mubr.bf16.mxu1 %v2838_v21 }
 0x483   :  { %1052 = vmatpush1.bf16.msra.mxu0 %v2606_v53  ;;  %1093 = vmatpush1.bf16.msra.mxu1 %v2286_v28 }
 0x484   :  { %1053 = vmatprep.subr.bf16.mxu0 %v2204_v8  ;;  %1094 = vmatprep.subr.bf16.mxu1 %v2290_v29  ;;  %v2634_v8 = vld [vmem:[#allocation2 + $0x4] ss:$16 sps:$4 sm:$0xff]  }
 0x487   :  { %1054 = vmatpush1.bf16.msra.mxu0 %v2210_v10  ;;  %1095 = vmatpush1.bf16.msra.mxu1 %v2296_v30 }
 0x488   :  { %1055 = vmatprep.subr.bf16.mxu0 %v2213_v11  ;;  %1096 = vmatprep.subr.bf16.mxu1 %v2300_v31 }
 0x48b   :  { %1056 = vmatpush1.bf16.msra.mxu0 %v2216_v12  ;;  %1097 = vmatpush1.bf16.msra.mxu1 %v2306_v32  ;;  %v2844_v12 = vld [vmem:[#allocation26_spill] sm:$0xff] }
 0x48c   :  { %1057 = vmatprep.subr.bf16.mxu0 %v2227_v15  ;;  %1098 = vmatprep.subr.bf16.mxu1 %v2310_v33 }
 0x48f   :  { %1058 = vmatpush1.bf16.msra.mxu0 %v2233_v17  ;;  %1099 = vmatpush1.bf16.msra.mxu1 %v2314_v34  ;;  %v2845_v17 = vld [vmem:[#allocation16_spill] sm:$0xff] }
 0x490   :  { %1059 = vmatprep.subr.bf16.mxu0 %v2237_v18  ;;  %1100 = vmatprep.subr.bf16.mxu1 %v2318_v35 }
 0x493   :  { %1060 = vmatpush1.bf16.msra.mxu0 %v2243_v19  ;;  %1101 = vmatpush1.bf16.msra.mxu1 %v2321_v36 }
 0x494   :  { %1061 = vmatprep.subr.bf16.mxu0 %v2247_v20  ;;  %1102 = vmatprep.subr.bf16.mxu1 %v2324_v37 }
 0x497   :  { %1062 = vmatpush1.bf16.msra.mxu0 %v2256_v22  ;;  %1103 = vmatpush1.bf16.msra.mxu1 %v2327_v38 }
 0x498   :  { %1063 = vmatprep.subr.bf16.mxu0 %v2260_v23  ;;  %1104 = vmatprep.subr.bf16.mxu1 %v2330_v39  ;;  %v2846_v23 = vld [vmem:[#allocation17_spill] sm:$0xff] }
 0x49b   :  { %1064 = vmatpush1.bf16.msra.mxu0 %v2262_v24  ;;  %1105 = vmatpush1.bf16.msra.mxu1 %v2333_v40 }
 0x49c   :  { %1160 = vmatprep.subr.bf16.mxu0 %v2634_v8  ;;  %1201 = vmatprep.subr.bf16.mxu1 %v2266_v25 }
 0x551   :  { %v972_v10 = vpop.f32.mrb[28].mxu0  ;;  %v1013_v11 = vpop.f32.mrb[36].mxu1 }
 0x552   :  { %v1020_v15 = vadd.f32 %v972_v10, %v2844_v12  ;;  %v1022_v18 = vadd.f32 %v1013_v11, %v2845_v17  ;;  %v974_v19 = vpop.f32.mrb[29].mxu0  ;;  %v1015_v20 = vpop.f32.mrb[37].mxu1  ;;  %v2847_v10 = vld [vmem:[#allocation18_spill] sm:$0xff]  ;;  %v2848_v17 = vld [vmem:[#allocation19_spill] sm:$0xff] }
 0x553   :  { %v1021_v22 = vadd.f32 %v974_v19, %v2433_v59  ;;  %v1023_v24 = vadd.f32 %v1015_v20, %v2846_v23  ;;  %v976_v54 = vpop.f32.mrb[30].mxu0  ;;  %v1017_v1 = vpop.f32.mrb[38].mxu1 }
 0x554   :  { %v1700_v2 = vmul.f32 -1.442695, %v1020_v15  ;;  %v977_v3 = vpop.f32.mrb[31].mxu0  ;;  %v1018_v44 = vpop.f32.mrb[39].mxu1  ;;  %v1702_v25 = vmul.f32 -1.442695, %v1022_v18 }
 0x555   :  { %v1701_v55 = vmul.f32 -1.442695, %v1021_v22 }
 0x556   :  { %1883 = vpow2.f32 %v1700_v2 }
 0x557   :  { %1885 = vpow2.f32 %v1701_v55 }
 0x558   :  { %1887 = vtanh.f32 %v1023_v24 }
 0x559   :  { %1889 = vpow2.f32 %v1702_v25 }
 0x560   :  { %v1884_v63 = vpop.eup %1883 }
 0x561   :  { %v1033_v4 = vadd.f32 1.0, %v1884_v63  ;;  %v1886_v61 = vpop.eup %1885 }
 0x562   :  { %v1034_v14 = vadd.f32 1.0, %v1886_v61  ;;  %v1888_v59 = vpop.eup %1887 }
 0x563   :  { %1891 = vrcp.f32 %v1033_v4  ;;  %v1890_v50 = vpop.eup %1889 }
 0x564   :  { %1893 = vrcp.f32 %v1034_v14  ;;  %v1035_v42 = vadd.f32 1.0, %v1890_v50 }
 0x566   :  { %1895 = vrcp.f32 %v1035_v42  ;;  %v1982_v42 = vld [vmem:[#allocation2 + $0x28] ss:$16 sps:$4 sm:$0xff]  }
 0x56d   :  { %v1892_v13 = vpop.eup %1891 }
 0x56e   :  { %v1044_v62 = vmul.f32 %v1892_v13, %v1888_v59  ;;  %v1894_v58 = vpop.eup %1893 }
 0x56f   :  { %v1043_v47 = vmul.f32 %v1894_v58, %v2589_v16  ;;  %v2658_v16 = vld [vmem:[#allocation2 + $0x44] ss:$16 sps:$4 sm:$0xff]   ;;  %v1981_v58 = vld [vmem:[#allocation2 + $0x2c] ss:$16 sps:$4 sm:$0xff]  }
 0x570   :  { %v1896_v5 = vpop.eup %1895 }
 0x571   :  { %v2643_v48 = vadd.f32 %v1044_v62, %v1043_v47  ;;  %v1980_v62 = vld [vmem:[#allocation2 + $0x8] ss:$16 sps:$4 sm:$0xff]   ;;  %v1983_v47 = vld [vmem:[#allocation2 + $0x4c] ss:$16 sps:$4 sm:$0xff]  }
 0x573   :  { %1897 = vtanh.f32 %v2643_v48 }
 0x57d   :  { %v1898_v6 = vpop.eup %1897 }
 0x57e   :  { %v2646_v7 = vmul.f32 %v1898_v6, %v1896_v5  ;;  %v1988_v5 = vld [vmem:[#allocation2 + $0x88] ss:$16 sps:$4 sm:$0xff]   ;;  %v1989_v6 = vld [vmem:[#allocation2 + $0xac] ss:$16 sps:$4 sm:$0xff]  }
 0x580   :  { %v1048_v49 = vpack.c.bf16 %v2646_v7, %v2646_v7 }
 0x582   :  { %1082 = vmatmul.mubr.bf16.vlgmr.msra.gmra.mrb[32].mxu0 %v1048_v49  ;;  %1123 = vmatmul.mubr.bf16.vlgmr.msra.gmra.mrb[40].mxu1 %v1048_v49  ;;  %v1990_v49 = vld [vmem:[#allocation2 + $0xa8] ss:$16 sps:$4 sm:$0xff]  }
 0x583   :  { %1161 = vmatpush1.bf16.msra.mxu0 %v2596_v0  ;;  %1202 = vmatpush1.bf16.msra.mxu1 %v2276_v26  ;;  %v2666_v26 = vld [vmem:[#allocation2 + $0x64] ss:$16 sps:$4 sm:$0xff]  }
 0x584   :  { %1162 = vmatprep.subr.bf16.mxu0 %v2600_v46  ;;  %1203 = vmatprep.subr.bf16.mxu1 %v2280_v27  ;;  %v2670_v27 = vld [vmem:[#allocation2 + $0x60] ss:$16 sps:$4 sm:$0xff]  }
 0x585   :  { %1192 = vmatprep.mubr.bf16.mxu0 %v2838_v21  ;;  %1233 = vmatprep.mubr.bf16.mxu1 %v2838_v21 }
 0x587   :  { %1163 = vmatpush1.bf16.msra.mxu0 %v2606_v53  ;;  %1204 = vmatpush1.bf16.msra.mxu1 %v2286_v28  ;;  %v2674_v28 = vld [vmem:[#allocation2 + $0x84] ss:$16 sps:$4 sm:$0xff]  }
 0x588   :  { %1164 = vmatprep.subr.bf16.mxu0 %v2658_v16  ;;  %1205 = vmatprep.subr.bf16.mxu1 %v2290_v29  ;;  %v2678_v29 = vld [vmem:[#allocation2 + $0x80] ss:$16 sps:$4 sm:$0xff]  }
 0x58b   :  { %1165 = vmatpush1.bf16.msra.mxu0 %v2662_v45  ;;  %1206 = vmatpush1.bf16.msra.mxu1 %v2296_v30  ;;  %v2682_v30 = vld [vmem:[#allocation2 + $0xa4] ss:$16 sps:$4 sm:$0xff]  }
 0x58c   :  { %1166 = vmatprep.subr.bf16.mxu0 %v2666_v26  ;;  %1207 = vmatprep.subr.bf16.mxu1 %v2300_v31  ;;  %v2686_v31 = vld [vmem:[#allocation2 + $0xa0] ss:$16 sps:$4 sm:$0xff]  }
 0x58f   :  { %1167 = vmatpush1.bf16.msra.mxu0 %v2670_v27  ;;  %1208 = vmatpush1.bf16.msra.mxu1 %v2306_v32  ;;  %v2690_v32 = vld [vmem:[#allocation2 + $0xc4] ss:$16 sps:$4 sm:$0xff]  }
 0x590   :  { %1168 = vmatprep.subr.bf16.mxu0 %v2674_v28  ;;  %1209 = vmatprep.subr.bf16.mxu1 %v2310_v33  ;;  %v2694_v33 = vld [vmem:[#allocation2 + $0xc0] ss:$16 sps:$4 sm:$0xff]  }
 0x593   :  { %1169 = vmatpush1.bf16.msra.mxu0 %v2678_v29  ;;  %1210 = vmatpush1.bf16.msra.mxu1 %v2314_v34  ;;  %v2698_v34 = vld [vmem:[#allocation2 + $0xe4] ss:$16 sps:$4 sm:$0xff]  }
 0x594   :  { %1170 = vmatprep.subr.bf16.mxu0 %v2682_v30  ;;  %1211 = vmatprep.subr.bf16.mxu1 %v2318_v35  ;;  %v2702_v35 = vld [vmem:[#allocation2 + $0xe0] ss:$16 sps:$4 sm:$0xff]  }
 0x597   :  { %1171 = vmatpush1.bf16.msra.mxu0 %v2686_v31  ;;  %1212 = vmatpush1.bf16.msra.mxu1 %v2321_v36  ;;  %v1979_v36 = vld [vmem:[#allocation2 + $0xc] ss:$16 sps:$4 sm:$0xff]  }
 0x598   :  { %1172 = vmatprep.subr.bf16.mxu0 %v2690_v32  ;;  %1213 = vmatprep.subr.bf16.mxu1 %v2324_v37 }
 0x59b   :  { %1173 = vmatpush1.bf16.msra.mxu0 %v2694_v33  ;;  %1214 = vmatpush1.bf16.msra.mxu1 %v2327_v38 }
 0x59c   :  { %1174 = vmatprep.subr.bf16.mxu0 %v2698_v34  ;;  %1215 = vmatprep.subr.bf16.mxu1 %v2330_v39 }
 0x59f   :  { %1175 = vmatpush1.bf16.msra.mxu0 %v2702_v35  ;;  %1216 = vmatpush1.bf16.msra.mxu1 %v2333_v40 }
 0x5a0   :  { %1271 = vmatprep.subr.bf16.mxu0 %v2634_v8  ;;  %1312 = vmatprep.subr.bf16.mxu1 %v1979_v36 }
 0x655   :  { %v1083_v37 = vpop.f32.mrb[32].mxu0  ;;  %v1124_v56 = vpop.f32.mrb[40].mxu1 }
 0x656   :  { %v1131_v38 = vadd.f32 %v1083_v37, %v2435_v57  ;;  %v1133_v11 = vadd.f32 %v1124_v56, %v2847_v10  ;;  %v1085_v12 = vpop.f32.mrb[33].mxu0  ;;  %v1126_v15 = vpop.f32.mrb[41].mxu1  ;;  %v2850_v56 = vld [vmem:[#allocation27_spill] sm:$0xff]  ;;  %v2851_v10 = vld [vmem:[#allocation21_spill] sm:$0xff] }
 0x657   :  { %v1132_v39 = vadd.f32 %v1085_v12, %v2437_v60  ;;  %v1134_v18 = vadd.f32 %v1126_v15, %v2848_v17  ;;  %v1087_v19 = vpop.f32.mrb[34].mxu0  ;;  %v1128_v20 = vpop.f32.mrb[42].mxu1 }
 0x658   :  { %v1703_v22 = vmul.f32 -1.442695, %v1131_v38  ;;  %v1088_v40 = vpop.f32.mrb[35].mxu0  ;;  %v1129_v23 = vpop.f32.mrb[43].mxu1  ;;  %v1705_v24 = vmul.f32 -1.442695, %v1133_v11 }
 0x659   :  { %v1704_v8 = vmul.f32 -1.442695, %v1132_v39 }
 0x65a   :  { %1899 = vpow2.f32 %v1703_v22 }
 0x65b   :  { %1901 = vpow2.f32 %v1704_v8 }
 0x65c   :  { %1903 = vtanh.f32 %v1134_v18 }
 0x65d   :  { %1905 = vpow2.f32 %v1705_v24 }
 0x664   :  { %v1900_v54 = vpop.eup %1899 }
 0x665   :  { %v1144_v1 = vadd.f32 1.0, %v1900_v54  ;;  %v1902_v57 = vpop.eup %1901 }
 0x666   :  { %v1145_v2 = vadd.f32 1.0, %v1902_v57  ;;  %v1904_v60 = vpop.eup %1903 }
 0x667   :  { %1907 = vrcp.f32 %v1144_v1  ;;  %v1906_v3 = vpop.eup %1905 }
 0x668   :  { %1909 = vrcp.f32 %v1145_v2  ;;  %v1146_v63 = vadd.f32 1.0, %v1906_v3 }
 0x66a   :  { %1911 = vrcp.f32 %v1146_v63  ;;  %v1800_v63 = vld [vmem:[#allocation5 + $0x14] ss:$8 sps:$4 sm:$0xff]  }
 0x671   :  { %v1908_v44 = vpop.eup %1907 }
 0x672   :  { %v1155_v55 = vmul.f32 %v1908_v44, %v1904_v60  ;;  %v1910_v25 = vpop.eup %1909 }
 0x673   :  { %v1154_v4 = vmul.f32 %v1910_v25, %v2643_v48  ;;  %v1986_v48 = vld [vmem:[#allocation2 + $0x68] ss:$16 sps:$4 sm:$0xff]  }
 0x674   :  { %v1912_v14 = vpop.eup %1911 }
 0x675   :  { %v2712_v61 = vadd.f32 %v1155_v55, %v1154_v4  ;;  %v1795_v55 = vld [vmem:[#allocation5] ss:$8 sps:$4 sm:$0xff]   ;;  %v1798_v4 = vld [vmem:[#allocation5 + $0x10] ss:$8 sps:$4 sm:$0xff]  }
 0x677   :  { %1913 = vtanh.f32 %v2712_v61 }
 0x681   :  { %v1914_v59 = vpop.eup %1913 }
 0x682   :  { %v2715_v50 = vmul.f32 %v1914_v59, %v1912_v14  ;;  %v1801_v14 = vld [vmem:[#allocation5 + $0x20] ss:$8 sps:$4 sm:$0xff]   ;;  %v1806_v59 = vld [vmem:[#allocation5 + $0x34] ss:$8 sps:$4 sm:$0xff]  }
 0x684   :  { %v1159_v13 = vpack.c.bf16 %v2715_v50, %v2715_v50 }
 0x686   :  { %1193 = vmatmul.mubr.bf16.vlgmr.msra.gmra.mrb[36].mxu0 %v1159_v13  ;;  %1234 = vmatmul.mubr.bf16.vlgmr.msra.gmra.mrb[44].mxu1 %v1159_v13  ;;  %v1804_v13 = vld [vmem:[#allocation5 + $0x30] ss:$8 sps:$4 sm:$0xff]  }
 0x687   :  { %1272 = vmatpush1.bf16.msra.mxu0 %v2596_v0  ;;  %1313 = vmatpush1.bf16.msra.mxu1 %v1980_v62  ;;  %v1984_v0 = vld [vmem:[#allocation2 + $0x48] ss:$16 sps:$4 sm:$0xff]   ;;  %v1809_v62 = vld [vmem:[#allocation5 + $0x44] ss:$8 sps:$4 sm:$0xff]  }
 0x688   :  { %1273 = vmatprep.subr.bf16.mxu0 %v2600_v46  ;;  %1314 = vmatprep.subr.bf16.mxu1 %v1981_v58  ;;  %v1985_v46 = vld [vmem:[#allocation2 + $0x6c] ss:$16 sps:$4 sm:$0xff]   ;;  %v1807_v58 = vld [vmem:[#allocation5 + $0x40] ss:$8 sps:$4 sm:$0xff]  }
 0x689   :  { %1303 = vmatprep.mubr.bf16.mxu0 %v2838_v21  ;;  %1344 = vmatprep.mubr.bf16.mxu1 %v2838_v21 }
 0x68b   :  { %1274 = vmatpush1.bf16.msra.mxu0 %v2606_v53  ;;  %1315 = vmatpush1.bf16.msra.mxu1 %v1982_v42  ;;  %v1987_v53 = vld [vmem:[#allocation2 + $0x8c] ss:$16 sps:$4 sm:$0xff]  }
 0x68c   :  { %1275 = vmatprep.subr.bf16.mxu0 %v2658_v16  ;;  %1316 = vmatprep.subr.bf16.mxu1 %v1983_v47  ;;  %v1991_v16 = vld [vmem:[#allocation2 + $0xcc] ss:$16 sps:$4 sm:$0xff]   ;;  %v1810_v47 = vld [vmem:[#allocation5 + $0x50] ss:$8 sps:$4 sm:$0xff]  }
 0x68d   :  { %v1812_v42 = vld [vmem:[#allocation5 + $0x54] ss:$8 sps:$4 sm:$0xff]  }
 0x68f   :  { %1276 = vmatpush1.bf16.msra.mxu0 %v2662_v45  ;;  %1317 = vmatpush1.bf16.msra.mxu1 %v1984_v0  ;;  %v1992_v45 = vld [vmem:[#allocation2 + $0xc8] ss:$16 sps:$4 sm:$0xff]   ;;  %v1815_v0 = vld [vmem:[#allocation5 + $0x64] ss:$8 sps:$4 sm:$0xff]  }
 0x690   :  { %1277 = vmatprep.subr.bf16.mxu0 %v2666_v26  ;;  %1318 = vmatprep.subr.bf16.mxu1 %v1985_v46  ;;  %v1993_v26 = vld [vmem:[#allocation2 + $0xec] ss:$16 sps:$4 sm:$0xff]   ;;  %v1813_v46 = vld [vmem:[#allocation5 + $0x60] ss:$8 sps:$4 sm:$0xff]  }
 0x693   :  { %1278 = vmatpush1.bf16.msra.mxu0 %v2670_v27  ;;  %1319 = vmatpush1.bf16.msra.mxu1 %v1986_v48  ;;  %v1994_v27 = vld [vmem:[#allocation2 + $0xe8] ss:$16 sps:$4 sm:$0xff]   ;;  %v1818_v48 = vld [vmem:[#allocation5 + $0x74] ss:$8 sps:$4 sm:$0xff]  }
 0x694   :  { %1279 = vmatprep.subr.bf16.mxu0 %v2674_v28  ;;  %1320 = vmatprep.subr.bf16.mxu1 %v1987_v53  ;;  %v1797_v28 = vld [vmem:[#allocation5 + $0x4] ss:$8 sps:$4 sm:$0xff]   ;;  %v1816_v53 = vld [vmem:[#allocation5 + $0x70] ss:$8 sps:$4 sm:$0xff]  }
 0x697   :  { %1280 = vmatpush1.bf16.msra.mxu0 %v2678_v29  ;;  %1321 = vmatpush1.bf16.msra.mxu1 %v1988_v5  ;;  %v1381_v5 = vpack.c.bf16 %v2500_v43, %v2454_v41  ;;  %v2853_v41 = vld [vmem:[#allocation23_spill] sm:$0xff] }
 0x698   :  { %1281 = vmatprep.subr.bf16.mxu0 %v2682_v30  ;;  %1322 = vmatprep.subr.bf16.mxu1 %v1989_v6  ;;  %v1382_v6 = vpack.c.bf16 %v2592_v51, %v2546_v52  ;;  %v2855_v52 = vld [vmem:[#allocation25_spill] sm:$0xff] }
 0x69b   :  { %1282 = vmatpush1.bf16.msra.mxu0 %v2686_v31  ;;  %1323 = vmatpush1.bf16.msra.mxu1 %v1990_v49  ;;  %v1383_v49 = vpack.c.bf16 %v2715_v50, %v2646_v7 }
 0x69c   :  { %1283 = vmatprep.subr.bf16.mxu0 %v2690_v32  ;;  %1324 = vmatprep.subr.bf16.mxu1 %v1991_v16  ;;  %v2849_v32 = vld [vmem:[#allocation20_spill] sm:$0xff] }
 0x69f   :  { %1284 = vmatpush1.bf16.msra.mxu0 %v2694_v33  ;;  %1325 = vmatpush1.bf16.msra.mxu1 %v1992_v45 }
 0x6a0   :  { %1285 = vmatprep.subr.bf16.mxu0 %v2698_v34  ;;  %1326 = vmatprep.subr.bf16.mxu1 %v1993_v26  ;;  %v2852_v26 = vld [vmem:[#allocation28_spill] sm:$0xff] }
 0x6a3   :  { %1286 = vmatpush1.bf16.msra.mxu0 %v2702_v35  ;;  %1327 = vmatpush1.bf16.msra.mxu1 %v1994_v27 }
 0x6a4   :  { %1493 = vmatprep.subr.bf16.mxu0 %v1797_v28 }
 0x759   :  { %v1194_v29 = vpop.f32.mrb[36].mxu0  ;;  %v1235_v30 = vpop.f32.mrb[44].mxu1 }
 0x75a   :  { %v1242_v31 = vadd.f32 %v1194_v29, %v2439_v9  ;;  %v1244_v36 = vadd.f32 %v1235_v30, %v2849_v32  ;;  %v1196_v37 = vpop.f32.mrb[37].mxu0  ;;  %v1237_v33 = vpop.f32.mrb[45].mxu1  ;;  %v2854_v30 = vld [vmem:[#allocation29_spill] sm:$0xff] }
 0x75b   :  { %v1243_v38 = vadd.f32 %v1196_v37, %v2850_v56  ;;  %v1245_v34 = vadd.f32 %v1237_v33, %v2851_v10  ;;  %v1198_v11 = vpop.f32.mrb[38].mxu0  ;;  %v1239_v12 = vpop.f32.mrb[46].mxu1 }
 0x75c   :  { %v1706_v15 = vmul.f32 -1.442695, %v1242_v31  ;;  %v1199_v35 = vpop.f32.mrb[39].mxu0  ;;  %v1240_v39 = vpop.f32.mrb[47].mxu1  ;;  %v1708_v18 = vmul.f32 -1.442695, %v1244_v36 }
 0x75d   :  { %v1707_v17 = vmul.f32 -1.442695, %v1243_v38 }
 0x75e   :  { %1915 = vpow2.f32 %v1706_v15  ;;  %v1401_v15 = vld [vmem:[%s2811_s5] sm:$0x3]  ;;  %s2097_s5 = smov [#allocation8]  }
 0x75f   :  { %1917 = vpow2.f32 %v1707_v17  ;;  %s1627_s10 = sshll.u32 %s2097_s5, 4  ;;  %s1628_s10 = int_to_ptr.vmem [resolvable:$true] %s1627_s10 }
 0x760   :  { %1919 = vtanh.f32 %v1245_v34  ;;  %s2061_s13 = scalar_lea.vmem %s1628_s10, 1024  ;;  %p2066_p11 = scmp.lt.s32.totalorder %s1628_s10, %s1628_s10 }
 0x761   :  { %1921 = vpow2.f32 %v1708_v18  ;;  %p2062_p10 = scmp.ne.s32.totalorder %s1628_s10, %s2061_s13  ;;  %p2067_p12 = scmp.lt.s32.totalorder %s2061_s13, %s2061_s13 }
 0x763   :  { %p2068_p13 = por %p2067_p12, %p2066_p11 }
 0x765   :  { %p2069_p0 = pnand %p2068_p13, %p2062_p10 }
 0x768   :  { %v1916_v19 = vpop.eup %1915 }
 0x769   :  { %v1255_v20 = vadd.f32 1.0, %v1916_v19  ;;  %v1918_v9 = vpop.eup %1917  ;;  %v2856_v19 = vld [vmem:[#allocation12_spill] sm:$0xff] }
 0x76a   :  { %v1256_v22 = vadd.f32 1.0, %v1918_v9  ;;  %v1920_v40 = vpop.eup %1919 }
 0x76b   :  { %1923 = vrcp.f32 %v1255_v20  ;;  %v1922_v23 = vpop.eup %1921  ;;  %v2857_v20 = vsub.s32 1, %v2856_v19 }
 0x76c   :  { %1925 = vrcp.f32 %v1256_v22  ;;  %v1257_v1 = vadd.f32 1.0, %v1922_v23 }
 0x76d   :  { %v2767_v9 = vrot.slane %v1401_v15, %v2857_v20 }
 0x76e   :  { %1927 = vrcp.f32 %v1257_v1 }
 0x775   :  { %v1924_v8 = vpop.eup %1923 }
 0x776   :  { %v1266_v24 = vmul.f32 %v1924_v8, %v1920_v40  ;;  %v1926_v54 = vpop.eup %1925 }
 0x777   :  { %v1265_v57 = vmul.f32 %v1926_v54, %v2712_v61  ;;  %v1803_v61 = vld [vmem:[#allocation5 + $0x24] ss:$8 sps:$4 sm:$0xff]  }
 0x778   :  { %v1928_v60 = vpop.eup %1927 }
 0x779   :  { %v2741_v2 = vadd.f32 %v1266_v24, %v1265_v57 }
 0x77b   :  { %1929 = vtanh.f32 %v2741_v2 }
 0x785   :  { %v1930_v3 = vpop.eup %1929 }
 0x786   :  { %v2744_v44 = vmul.f32 %v1930_v3, %v1928_v60 }
 0x788   :  { %v1270_v25 = vpack.c.bf16 %v2744_v44, %v2744_v44 }
 0x78a   :  { %1304 = vmatmul.mubr.bf16.vlgmr.msra.gmra.mrb[40].mxu0 %v1270_v25  ;;  %1345 = vmatmul.mubr.bf16.vlgmr.msra.gmra.mrb[48].mxu1 %v1270_v25 }
 0x78b   :  { %1494 = vmatpush1.bf16.msra.mxu0 %v1795_v55  ;;  %1525 = vmatprep.mubr.bf16.mxu0 %v2838_v21 }
 0x78c   :  { %1495 = vmatprep.subr.bf16.mxu0 %v1800_v63 }
 0x78f   :  { %1496 = vmatpush1.bf16.msra.mxu0 %v1798_v4 }
 0x790   :  { %1497 = vmatprep.subr.bf16.mxu0 %v1803_v61 }
 0x793   :  { %1498 = vmatpush1.bf16.msra.mxu0 %v1801_v14 }
 0x794   :  { %1499 = vmatprep.subr.bf16.mxu0 %v1806_v59 }
 0x797   :  { %1500 = vmatpush1.bf16.msra.mxu0 %v1804_v13 }
 0x798   :  { %1501 = vmatprep.subr.bf16.mxu0 %v1809_v62 }
 0x79b   :  { %1502 = vmatpush1.bf16.msra.mxu0 %v1807_v58 }
 0x79c   :  { %1503 = vmatprep.subr.bf16.mxu0 %v1812_v42 }
 0x79f   :  { %1504 = vmatpush1.bf16.msra.mxu0 %v1810_v47 }
 0x7a0   :  { %1505 = vmatprep.subr.bf16.mxu0 %v1815_v0 }
 0x7a3   :  { %1506 = vmatpush1.bf16.msra.mxu0 %v1813_v46  ;;  %v2858_v46 = vsub.s32 0, %v2856_v19 }
 0x7a4   :  { %1507 = vmatprep.subr.bf16.mxu0 %v1818_v48 }
 0x7a5   :  { %v2776_v48 = vrot.slane %v1401_v15, %v2858_v46 }
 0x7a7   :  { %1508 = vmatpush1.bf16.msra.mxu0 %v1816_v53  ;;  %v1566_v53 = vld [vmem:[#allocation7] sm:$0xff] }
 0x7aa   :  { %1526 = vmatmul.mubr.bf16.vlgmr.msra.gmra.mrb[44].mxu0 %v1381_v5 }
 0x7ab   :  { %1535 = vmatprep.mubr.bf16.mxu0 %v2838_v21 }
 0x7b2   :  { %1536 = vmatmul.mubr.bf16.gmra.mrb[48].mxu0 %v1382_v6 }
 0x7b3   :  { %1545 = vmatprep.mubr.bf16.mxu0 %v2838_v21 }
 0x7ba   :  { %1546 = vmatmul.mubr.bf16.gmra.mrb[52].mxu0 %v1383_v49 }
 0x7bb   :  { %1555 = vmatprep.mubr.bf16.mxu0 %v2838_v21 }
 0x85d   :  { %v1305_v16 = vpop.f32.mrb[40].mxu0  ;;  %v1346_v45 = vpop.f32.mrb[48].mxu1 }
 0x85e   :  { %v1353_v27 = vadd.f32 %v1305_v16, %v2852_v26  ;;  %v1355_v43 = vadd.f32 %v1346_v45, %v2853_v41  ;;  %v1307_v28 = vpop.f32.mrb[41].mxu0  ;;  %v1348_v29 = vpop.f32.mrb[49].mxu1  ;;  %v1567_v26 = vld [vmem:[#allocation7 + $0x8] sm:$0xff] }
 0x85f   :  { %v1354_v31 = vadd.f32 %v1307_v28, %v2854_v30  ;;  %v1356_v51 = vadd.f32 %v1348_v29, %v2855_v52  ;;  %v1309_v32 = vpop.f32.mrb[42].mxu0  ;;  %v1350_v36 = vpop.f32.mrb[50].mxu1 }
 0x860   :  { %v1709_v37 = vmul.f32 -1.442695, %v1353_v27  ;;  %v1310_v33 = vpop.f32.mrb[43].mxu0  ;;  %v1351_v7 = vpop.f32.mrb[51].mxu1  ;;  %v1711_v21 = vmul.f32 -1.442695, %v1355_v43 }
 0x861   :  { %v1710_v50 = vmul.f32 -1.442695, %v1354_v31  ;;  %v1568_v7 = vld [vmem:[#allocation7 + $0x10] sm:$0xff] }
 0x862   :  { %1931 = vpow2.f32 %v1709_v37 }
 0x863   :  { %1933 = vpow2.f32 %v1710_v50 }
 0x864   :  { %1935 = vtanh.f32 %v1356_v51 }
 0x865   :  { %1937 = vpow2.f32 %v1711_v21 }
 0x86c   :  { %v1932_v56 = vpop.eup %1931 }
 0x86d   :  { %v1366_v38 = vadd.f32 1.0, %v1932_v56  ;;  %v1934_v10 = vpop.eup %1933  ;;  %v1569_v56 = vld [vmem:[#allocation7 + $0x18] sm:$0xff] }
 0x86e   :  { %v1367_v34 = vadd.f32 1.0, %v1934_v10  ;;  %v1936_v11 = vpop.eup %1935 }
 0x86f   :  { %1939 = vrcp.f32 %v1366_v38  ;;  %v1938_v12 = vpop.eup %1937 }
 0x870   :  { %1941 = vrcp.f32 %v1367_v34  ;;  %v1368_v18 = vadd.f32 1.0, %v1938_v12 }
 0x872   :  { %1943 = vrcp.f32 %v1368_v18  ;;  %v1571_v18 = vld [vmem:[#allocation7 + $0x28] sm:$0xff] }
 0x879   :  { %v1940_v35 = vpop.eup %1939 }
 0x87a   :  { %v1377_v39 = vmul.f32 %v1940_v35, %v1936_v11  ;;  %v1942_v17 = vpop.eup %1941 }
 0x87b   :  { %v1376_v22 = vmul.f32 %v1942_v17, %v2741_v2 }
 0x87c   :  { %v1944_v59 = vpop.eup %1943 }
 0x87d   :  { %v1527_v40 = vpop.f32.mrb[44].mxu0  ;;  %v1378_v23 = vadd.f32 %v1377_v39, %v1376_v22  ;;  %v1570_v39 = vld [vmem:[#allocation7 + $0x20] sm:$0xff] }
 0x87e   :  { %v1529_v8 = vpop.f32.mrb[45].mxu0  ;;  %v1528_v43 = vadd.f32 %v1527_v40, %v2776_v48 }
 0x87f   :  { %v1530_v24 = vadd.f32 %v1529_v8, %v2767_v9  ;;  %v1531_v54 = vpop.f32.mrb[46].mxu0  ;;  %1945 = vtanh.f32 %v1378_v23 }
 0x880   :  { %v1533_v1 = vpop.f32.mrb[47].mxu0  ;;  %v1532_v32 = vadd.f32 %v1531_v54, %v2776_v48 }
 0x881   :  { %v1574_v57 = vmul.f32 0.5, %v1530_v24  ;;  %v1534_v60 = vadd.f32 %v1533_v1, %v2767_v9 }
 0x883   :  { %v1582_v3 = vmul.f32 1.442695, %v1574_v57  ;;  %v1575_v55 = vmul.f32 0.5, %v1534_v60 }
 0x885   :  { %1947 = vpow2.f32 %v1582_v3  ;;  %v1584_v25 = vmul.f32 1.442695, %v1575_v55  ;;  %v1537_v63 = vpop.f32.mrb[48].mxu0 }
 0x886   :  { %v1539_v4 = vpop.f32.mrb[49].mxu0  ;;  %v1538_v38 = vadd.f32 %v1537_v63, %v2776_v48 }
 0x887   :  { %1949 = vpow2.f32 %v1584_v25  ;;  %v1540_v2 = vadd.f32 %v1539_v4, %v2767_v9  ;;  %v1541_v61 = vpop.f32.mrb[50].mxu0 }
 0x888   :  { %v1543_v14 = vpop.f32.mrb[51].mxu0  ;;  %v1542_v12 = vadd.f32 %v1541_v61, %v2776_v48  ;;  %v1572_v61 = vld [vmem:[#allocation7 + $0x30] sm:$0xff] }
 0x889   :  { %v1576_v13 = vmul.f32 0.5, %v1540_v2  ;;  %v1544_v62 = vadd.f32 %v1543_v14, %v2767_v9  ;;  %v1946_v58 = vpop.eup %1945 }
 0x88a   :  { %v1380_v0 = vmul.f32 %v1946_v58, %v1944_v59  ;;  %v1573_v59 = vld [vmem:[#allocation7 + $0x38] sm:$0xff] }
 0x88b   :  { %v1586_v42 = vmul.f32 1.442695, %v1576_v13  ;;  %v1577_v47 = vmul.f32 0.5, %v1544_v62 }
 0x88c   :  { %v1384_v49 = vpack.c.bf16 %v1380_v0, %v2744_v44 }
 0x88d   :  { %1951 = vpow2.f32 %v1586_v42  ;;  %v1588_v5 = vmul.f32 1.442695, %v1577_v47  ;;  %v1547_v6 = vpop.f32.mrb[52].mxu0 }
 0x88e   :  { %v1549_v16 = vpop.f32.mrb[53].mxu0  ;;  %1556 = vmatmul.mubr.bf16.gmra.mrb[56].mxu0 %v1384_v49  ;;  %v1548_v19 = vadd.f32 %v1547_v6, %v2776_v48 }
 0x88f   :  { %v1948_v45 = vpop.eup %1947  ;;  %1953 = vpow2.f32 %v1588_v5  ;;  %v1550_v27 = vadd.f32 %v1549_v16, %v2767_v9  ;;  %v1551_v41 = vpop.f32.mrb[54].mxu0 }
 0x890   :  { %v1598_v28 = vmul.f32 %v1948_v45, %v1566_v53  ;;  %v1553_v29 = vpop.f32.mrb[55].mxu0  ;;  %v1552_v23 = vadd.f32 %v1551_v41, %v2776_v48 }
 0x891   :  { %v1950_v30 = vpop.eup %1949  ;;  %v1578_v31 = vmul.f32 0.5, %v1550_v27  ;;  %v1554_v52 = vadd.f32 %v1553_v29, %v2767_v9 }
 0x892   :  { %v1606_v51 = vadd.f32 %v1598_v28, %v1528_v43  ;;  %v1599_v44 = vmul.f32 %v1950_v30, %v1567_v26 }
 0x893   :  { %v1590_v36 = vmul.f32 1.442695, %v1578_v31  ;;  %v1579_v37 = vmul.f32 0.5, %v1554_v52 }
 0x894   :  { %1614 = vst [vmem:[#allocation8] sm:$0xff] %v1606_v51  ;;  %v1607_v33 = vadd.f32 %v1599_v44, %v1532_v32 }
 0x895   :  { %1955 = vpow2.f32 %v1590_v36  ;;  %v1592_v50 = vmul.f32 1.442695, %v1579_v37 }
 0x896   :  { %1615 = vst [vmem:[#allocation8 + $0x8] sm:$0xff] %v1607_v33 }
 0x897   :  { %v1952_v21 = vpop.eup %1951  ;;  %1957 = vpow2.f32 %v1592_v50 }
 0x898   :  { %v1600_v10 = vmul.f32 %v1952_v21, %v1568_v7 }
 0x899   :  { %v1954_v34 = vpop.eup %1953 }
 0x89a   :  { %v1608_v11 = vadd.f32 %v1600_v10, %v1538_v38  ;;  %v1601_v15 = vmul.f32 %v1954_v34, %v1569_v56 }
 0x89c   :  { %1616 = vst [vmem:[#allocation8 + $0x10] sm:$0xff] %v1608_v11  ;;  %v1609_v35 = vadd.f32 %v1601_v15, %v1542_v12 }
 0x89e   :  { %1617 = vst [vmem:[#allocation8 + $0x18] sm:$0xff] %v1609_v35 }
 0x89f   :  { %v1956_v17 = vpop.eup %1955 }
 0x8a0   :  { %v1602_v20 = vmul.f32 %v1956_v17, %v1570_v39 }
 0x8a1   :  { %v1958_v22 = vpop.eup %1957 }
 0x8a2   :  { %v1610_v40 = vadd.f32 %v1602_v20, %v1548_v19  ;;  %v1603_v8 = vmul.f32 %v1958_v22, %v1571_v18 }
 0x8a4   :  { %1618 = vst [vmem:[#allocation8 + $0x20] sm:$0xff] %v1610_v40  ;;  %v1611_v24 = vadd.f32 %v1603_v8, %v1552_v23 }
 0x8a6   :  { %1619 = vst [vmem:[#allocation8 + $0x28] sm:$0xff] %v1611_v24 }
 0x961   :  { %v1557_v54 = vpop.f32.mrb[56].mxu0 }
 0x962   :  { %v1559_v1 = vpop.f32.mrb[57].mxu0  ;;  %v1558_v13 = vadd.f32 %v1557_v54, %v2776_v48 }
 0x963   :  { %v1560_v57 = vadd.f32 %v1559_v1, %v2767_v9  ;;  %v1561_v60 = vpop.f32.mrb[58].mxu0 }
 0x964   :  { %v1563_v3 = vpop.f32.mrb[59].mxu0  ;;  %v1562_v47 = vadd.f32 %v1561_v60, %v2776_v48 }
 0x965   :  { %v1580_v55 = vmul.f32 0.5, %v1560_v57  ;;  %v1564_v25 = vadd.f32 %v1563_v3, %v2767_v9 }
 0x967   :  { %v1594_v63 = vmul.f32 1.442695, %v1580_v55  ;;  %v1581_v4 = vmul.f32 0.5, %v1564_v25 }
 0x969   :  { %1959 = vpow2.f32 %v1594_v63  ;;  %v1596_v2 = vmul.f32 1.442695, %v1581_v4 }
 0x96b   :  { %1961 = vpow2.f32 %v1596_v2 }
 0x973   :  { %v1960_v14 = vpop.eup %1959 }
 0x974   :  { %v1604_v62 = vmul.f32 %v1960_v14, %v1572_v61 }
 0x975   :  { %v1962_v58 = vpop.eup %1961 }
 0x976   :  { %v1612_v42 = vadd.f32 %v1604_v62, %v1558_v13  ;;  %v1605_v0 = vmul.f32 %v1962_v58, %v1573_v59 }
 0x978   :  { %1620 = vst [vmem:[#allocation8 + $0x30] sm:$0xff] %v1612_v42  ;;  %v1613_v9 = vadd.f32 %v1605_v0, %v1562_v47 }
 0x97a   :  { %1621 = vst [vmem:[#allocation8 + $0x38] sm:$0xff] %v1613_v9 }
 0x97b   :  { %2072 = shalt.err (!%p2069_p0)
}
 0x97c   :  { %s2073_s17 = scalar_lea.hbm %s2813_s7, 1024 }
 0x97d   :  { %p2074_p1 = scmp.ne.s32.totalorder %s2813_s7, %s2073_s17  ;;  %p2077_p2 = scmp.lt.u32.totalorder %s2073_s17, %s2813_s7 }
 0x97f   :  { %p2079_p3 = pnand %p2077_p2, %p2074_p1 }
 0x981   :  { %2082 = shalt.err (!%p2079_p3)
}
 0x982   :  { %1633 = dma.vmem_to_hbm [thread:$0]  %s1628_s10, 1024, %s2813_s7, [#allocation4], %s2090_s11, %s2090_s11, %s2091_s12  }
 0x983   :  { %2087 = dma.done.wait [#allocation4], 1024  }
 0x984   :  { %2088 = vsyncadd [#allocation4], 4294966272 }
 0x985   :  { %1637 = vsyncpa [#allocation3], 1 }
 0x986   :  { %1638 = vsyncpa [#allocation6], 1 }
 0x987   :  { %1639 = vsyncpa [#allocation4], 1 }

</bundles_post_ra>
